<compile_context>
chip_gen: v7x
topology: tpu7x:2x2x1
jax: 0.10.0
libtpu: 0.0.40
codegen_flags: <defaults>
</compile_context>

<pallas_src>
import functools

import jax
import jax.numpy as jnp
from jax import lax
from jax.experimental import pallas as pl
from jax.experimental.pallas import tpu as pltpu

LANE = 128
SUBLANE = 8
N_BANDS = 31


def _rmse_band_kernel(hw, rows, tile_rows, needs_row_mask,
                      o_ref, t_ref, out_ref, acc_ref):
    # o_ref/t_ref: (Bc, tile_rows, LANE) VMEM tiles (Bc bands folded per step).
    # out_ref:     (Bc, 1) SMEM per-band RMSE block.
    # acc_ref:     (Bc, SUBLANE, LANE) f32 VMEM partial-sum accumulator.
    j = pl.program_id(1)
    n_j = pl.num_programs(1)
    bc = acc_ref.shape[0]

    @pl.when(j == 0)
    def _():
        acc_ref[...] = jnp.zeros_like(acc_ref)

    def accumulate(mask_rows):
        diff = o_ref[...].astype(jnp.float32) - t_ref[...].astype(jnp.float32)
        if mask_rows:
            # Only the last (partial) row tile can overrun `rows`; zero the
            # invalid rows so OOB garbage contributes exactly 0 to the sum.
            ridx = lax.broadcasted_iota(jnp.int32, diff.shape, 1)
            diff = jnp.where(ridx < rows - j * tile_rows, diff, 0.0)
        sq = diff * diff
        # Fold sublane groups with pure VPU adds into a fixed (8,128) accumulator
        # per band; tile_rows is always a multiple of 8 -> vreg-aligned, no XLU.
        for b in range(bc):
            part = jnp.sum(sq[b].reshape(tile_rows // SUBLANE, SUBLANE, LANE),
                           axis=0)
            acc_ref[b] = acc_ref[b] + part

    if needs_row_mask:
        # Mask is gated: full tiles take the unmasked (cheaper) path.
        @pl.when(j < n_j - 1)
        def _():
            accumulate(False)

        @pl.when(j == n_j - 1)
        def _():
            accumulate(True)
    else:
        accumulate(False)

    @pl.when(j == n_j - 1)
    def _():
        # One cross-lane reduce + sqrt per band, once per band group.
        for b in range(bc):
            total = jnp.sum(acc_ref[b])
            out_ref[b, 0] = jnp.sqrt(total / jnp.float32(hw))


def rmse_band_pallas(output: jax.Array, target: jax.Array, *,
                     target_block_rows: int = 4096) -> jax.Array:
    """Per-band RMSE over H*W for each of the 31 bands (matches Loss_RMSEBand)."""
    assert output.shape == target.shape, "output/target shapes must match"
    assert output.ndim == 4 and output.shape[0] == 1 and output.shape[1] == N_BANDS
    _, c, h, w = output.shape
    hw = h * w

    o2 = output.reshape(c, hw)
    t2 = target.reshape(c, hw)
    # Pad the pixel axis to a multiple of 8*128 so rows % 8 == 0 (vreg-aligned
    # folds, no relayout).  Zero padding adds 0 to the squared-error sum and the
    # mean still divides by the true hw.  No-op for typical H*W (e.g. 256x256).
    pad = (-hw) % (SUBLANE * LANE)
    if pad:
        o2 = jnp.pad(o2, ((0, 0), (0, pad)))
        t2 = jnp.pad(t2, ((0, 0), (0, pad)))
    rows = o2.shape[1] // LANE           # always a multiple of 8
    o3 = o2.reshape(c, rows, LANE)       # contiguous reshape: no HBM round-trip
    t3 = t2.reshape(c, rows, LANE)

    # Tile sizing: ~2 MiB f32 per input block (4096 rows x 128 lanes) amortizes
    # the ~0.35 us/step grid overhead on v5e/v6e/v7x; double-buffered footprint
    # (2 inputs x 2 bufs x 2 MiB = 8 MiB) fits every scoped-VMEM default.
    target_block_rows = max(SUBLANE, (target_block_rows // SUBLANE) * SUBLANE)
    if rows >= target_block_rows:
        bc = 1
        tile_rows = target_block_rows
        n_row_tiles = pl.cdiv(rows, tile_rows)
        needs_row_mask = (rows % tile_rows) != 0
    else:
        # Small per-band slabs: fold several bands into one block so each grid
        # step still moves ~2 MiB (avoids the overhead-bound tiny-step regime).
        bc = min(c, max(1, target_block_rows // rows))
        tile_rows = rows
        n_row_tiles = 1
        needs_row_mask = False
    n_groups = pl.cdiv(c, bc)
    # Pad the (tiny) output on the band axis so every output block is in-bounds;
    # OOB *input* bands in the last group read unspecified data but accumulate
    # into their own (discarded) lanes, so valid bands are unaffected.
    c_pad = n_groups * bc

    kernel = functools.partial(_rmse_band_kernel, hw, rows, tile_rows,
                               needs_row_mask)

    out = pl.pallas_call(
        kernel,
        out_shape=jax.ShapeDtypeStruct((c_pad, 1), jnp.float32),
        grid_spec=pltpu.PrefetchScalarGridSpec(
            num_scalar_prefetch=0,
            grid=(n_groups, n_row_tiles),   # reduction (row-tile) axis last
            in_specs=[
                pl.BlockSpec((bc, tile_rows, LANE), lambda g, j: (g, j, 0)),
                pl.BlockSpec((bc, tile_rows, LANE), lambda g, j: (g, j, 0)),
            ],
            out_specs=pl.BlockSpec((bc, 1), lambda g, j: (g, 0),
                                   memory_space=pltpu.SMEM),
            scratch_shapes=[pltpu.VMEM((bc, SUBLANE, LANE), jnp.float32)],
        ),
        compiler_params=pltpu.CompilerParams(
            # Band-group axis is independent (megacore-shardable); row tiles reduce.
            dimension_semantics=("parallel", "arbitrary"),
        ),
    )(o3, t3)
    return out[:c, 0]


def rmse_band_ref(output: jax.Array, target: jax.Array) -> jax.Array:
    err = (output.astype(jnp.float32) - target.astype(jnp.float32))[0]  # (31,H,W)
    return jnp.sqrt(jnp.mean(err * err, axis=(1, 2)))


if __name__ == "__main__":
    key = jax.random.PRNGKey(0)
    k1, k2, k3, k4 = jax.random.split(key, 4)

    # Small shape implied by the module's asserts: batch=1, 31 bands.
    x = jax.random.normal(k1, (1, 31, 16, 16), dtype=jnp.float32)
    y = jax.random.normal(k2, (1, 31, 16, 16), dtype=jnp.float32)
    got = jax.block_until_ready(rmse_band_pallas(x, y))
    want = jax.block_until_ready(rmse_band_ref(x, y))
    assert got.shape == (31,), got.shape
    assert jnp.allclose(got, want, rtol=1e-5, atol=1e-6), (got, want)

    # Second shape exercising the band-folded path with a partial last band group.
    x2 = jax.random.normal(k3, (1, 31, 136, 128), dtype=jnp.float32)
    y2 = jax.random.normal(k4, (1, 31, 136, 128), dtype=jnp.float32)
    got2 = jax.block_until_ready(rmse_band_pallas(x2, y2))
    want2 = jax.block_until_ready(rmse_band_ref(x2, y2))
    assert got2.shape == (31,), got2.shape
    assert jnp.allclose(got2, want2, rtol=1e-5, atol=1e-6), (got2, want2)

    print("KERNEL_OK")
</pallas_src>

<mosaic_0001>
module attributes {stable_mosaic.version = 11 : i64} {
  func.func @_rmse_band_kernel(%arg0: i32, %arg1: i32, %arg2: memref<31x8x128xf32, #tpu.memory_space<vmem>>, %arg3: memref<31x8x128xf32, #tpu.memory_space<vmem>>, %arg4: memref<31x1xf32, #tpu.memory_space<smem>>, %arg5: memref<31x8x128xf32, #tpu.memory_space<vmem>>) attributes {dimension_semantics = [#tpu.dimension_semantics<parallel>, #tpu.dimension_semantics<arbitrary>], iteration_bounds = array<i64: 1, 1>, scalar_prefetch = 0 : i64, scratch_operands = 1 : i64, tpu.core_type = #tpu.core_type<tc>, window_params = [{transform_indices = @transform_0, window_bounds = array<i64: 31, 8, 128>}, {transform_indices = @transform_1, window_bounds = array<i64: 31, 8, 128>}, {transform_indices = @transform_2, window_bounds = array<i64: 31, 1>}]} {
    %c0_i32 = arith.constant 0 : i32
    %0 = arith.cmpi eq, %arg1, %c0_i32 : i32
    %1 = arith.extui %0 : i1 to i32
    %c0_i32_0 = arith.constant 0 : i32
    %2 = arith.cmpi ne, %1, %c0_i32_0 : i32
    scf.if %2 {
      %cst_194 = arith.constant 0.000000e+00 : f32
      %320 = vector.broadcast %cst_194 : f32 to vector<31x8x128xf32>
      %c0_195 = arith.constant 0 : index
      %c0_196 = arith.constant 0 : index
      %c0_197 = arith.constant 0 : index
      %321 = vector.load %arg5[%c0_195, %c0_196, %c0_197] : memref<31x8x128xf32, #tpu.memory_space<vmem>>, vector<31x8x128xf32>
      tpu.vector_store %arg5[%c0_195, %c0_196, %c0_197], %320 {strides = array<i32>} : memref<31x8x128xf32, #tpu.memory_space<vmem>>, vector<31x8x128xf32>,
    } else {
    }
    %c0 = arith.constant 0 : index
    %c0_1 = arith.constant 0 : index
    %c0_2 = arith.constant 0 : index
    %3 = vector.load %arg2[%c0, %c0_1, %c0_2] : memref<31x8x128xf32, #tpu.memory_space<vmem>>, vector<31x8x128xf32>
    %c0_3 = arith.constant 0 : index
    %c0_4 = arith.constant 0 : index
    %c0_5 = arith.constant 0 : index
    %4 = vector.load %arg3[%c0_3, %c0_4, %c0_5] : memref<31x8x128xf32, #tpu.memory_space<vmem>>, vector<31x8x128xf32>
    %5 = arith.subf %3, %4 : vector<31x8x128xf32>
    %6 = arith.mulf %5, %5 : vector<31x8x128xf32>
    %7 = vector.extract_strided_slice %6 {offsets = [0, 0, 0], sizes = [1, 8, 128], strides = [1, 1, 1]} : vector<31x8x128xf32> to vector<1x8x128xf32>
    %8 = vector.shape_cast %7 : vector<1x8x128xf32> to vector<8x128xf32>
    %9 = vector.shape_cast %8 : vector<8x128xf32> to vector<1x8x128xf32>
    %cst = arith.constant dense<0.000000e+00> : vector<8x128xf32>
    %10 = vector.multi_reduction <add>, %9, %cst [0] : vector<1x8x128xf32> to vector<8x128xf32>
    %c0_6 = arith.constant 0 : index
    %c0_7 = arith.constant 0 : index
    %c0_8 = arith.constant 0 : index
    %11 = vector.load %arg5[%c0_6, %c0_7, %c0_8] : memref<31x8x128xf32, #tpu.memory_space<vmem>>, vector<1x8x128xf32>
    %12 = vector.shape_cast %11 : vector<1x8x128xf32> to vector<8x128xf32>
    %13 = arith.addf %12, %10 : vector<8x128xf32>
    %c0_9 = arith.constant 0 : index
    %c0_10 = arith.constant 0 : index
    %c0_11 = arith.constant 0 : index
    %14 = vector.load %arg5[%c0_9, %c0_10, %c0_11] : memref<31x8x128xf32, #tpu.memory_space<vmem>>, vector<1x8x128xf32>
    %15 = vector.shape_cast %14 : vector<1x8x128xf32> to vector<8x128xf32>
    %16 = vector.shape_cast %13 : vector<8x128xf32> to vector<1x8x128xf32>
    tpu.vector_store %arg5[%c0_9, %c0_10, %c0_11], %16 {strides = array<i32>} : memref<31x8x128xf32, #tpu.memory_space<vmem>>, vector<1x8x128xf32>,
    %17 = vector.extract_strided_slice %6 {offsets = [1, 0, 0], sizes = [1, 8, 128], strides = [1, 1, 1]} : vector<31x8x128xf32> to vector<1x8x128xf32>
    %18 = vector.shape_cast %17 : vector<1x8x128xf32> to vector<8x128xf32>
    %19 = vector.shape_cast %18 : vector<8x128xf32> to vector<1x8x128xf32>
    %cst_12 = arith.constant dense<0.000000e+00> : vector<8x128xf32>
    %20 = vector.multi_reduction <add>, %19, %cst_12 [0] : vector<1x8x128xf32> to vector<8x128xf32>
    %c1 = arith.constant 1 : index
    %c0_13 = arith.constant 0 : index
    %c0_14 = arith.constant 0 : index
    %21 = vector.load %arg5[%c1, %c0_13, %c0_14] : memref<31x8x128xf32, #tpu.memory_space<vmem>>, vector<1x8x128xf32>
    %22 = vector.shape_cast %21 : vector<1x8x128xf32> to vector<8x128xf32>
    %23 = arith.addf %22, %20 : vector<8x128xf32>
    %c1_15 = arith.constant 1 : index
    %c0_16 = arith.constant 0 : index
    %c0_17 = arith.constant 0 : index
    %24 = vector.load %arg5[%c1_15, %c0_16, %c0_17] : memref<31x8x128xf32, #tpu.memory_space<vmem>>, vector<1x8x128xf32>
    %25 = vector.shape_cast %24 : vector<1x8x128xf32> to vector<8x128xf32>
    %26 = vector.shape_cast %23 : vector<8x128xf32> to vector<1x8x128xf32>
    tpu.vector_store %arg5[%c1_15, %c0_16, %c0_17], %26 {strides = array<i32>} : memref<31x8x128xf32, #tpu.memory_space<vmem>>, vector<1x8x128xf32>,
    %27 = vector.extract_strided_slice %6 {offsets = [2, 0, 0], sizes = [1, 8, 128], strides = [1, 1, 1]} : vector<31x8x128xf32> to vector<1x8x128xf32>
    %28 = vector.shape_cast %27 : vector<1x8x128xf32> to vector<8x128xf32>
    %29 = vector.shape_cast %28 : vector<8x128xf32> to vector<1x8x128xf32>
    %cst_18 = arith.constant dense<0.000000e+00> : vector<8x128xf32>
    %30 = vector.multi_reduction <add>, %29, %cst_18 [0] : vector<1x8x128xf32> to vector<8x128xf32>
    %c2 = arith.constant 2 : index
    %c0_19 = arith.constant 0 : index
    %c0_20 = arith.constant 0 : index
    %31 = vector.load %arg5[%c2, %c0_19, %c0_20] : memref<31x8x128xf32, #tpu.memory_space<vmem>>, vector<1x8x128xf32>
    %32 = vector.shape_cast %31 : vector<1x8x128xf32> to vector<8x128xf32>
    %33 = arith.addf %32, %30 : vector<8x128xf32>
    %c2_21 = arith.constant 2 : index
    %c0_22 = arith.constant 0 : index
    %c0_23 = arith.constant 0 : index
    %34 = vector.load %arg5[%c2_21, %c0_22, %c0_23] : memref<31x8x128xf32, #tpu.memory_space<vmem>>, vector<1x8x128xf32>
    %35 = vector.shape_cast %34 : vector<1x8x128xf32> to vector<8x128xf32>
    %36 = vector.shape_cast %33 : vector<8x128xf32> to vector<1x8x128xf32>
    tpu.vector_store %arg5[%c2_21, %c0_22, %c0_23], %36 {strides = array<i32>} : memref<31x8x128xf32, #tpu.memory_space<vmem>>, vector<1x8x128xf32>,
    %37 = vector.extract_strided_slice %6 {offsets = [3, 0, 0], sizes = [1, 8, 128], strides = [1, 1, 1]} : vector<31x8x128xf32> to vector<1x8x128xf32>
    %38 = vector.shape_cast %37 : vector<1x8x128xf32> to vector<8x128xf32>
    %39 = vector.shape_cast %38 : vector<8x128xf32> to vector<1x8x128xf32>
    %cst_24 = arith.constant dense<0.000000e+00> : vector<8x128xf32>
    %40 = vector.multi_reduction <add>, %39, %cst_24 [0] : vector<1x8x128xf32> to vector<8x128xf32>
    %c3 = arith.constant 3 : index
    %c0_25 = arith.constant 0 : index
    %c0_26 = arith.constant 0 : index
    %41 = vector.load %arg5[%c3, %c0_25, %c0_26] : memref<31x8x128xf32, #tpu.memory_space<vmem>>, vector<1x8x128xf32>
    %42 = vector.shape_cast %41 : vector<1x8x128xf32> to vector<8x128xf32>
    %43 = arith.addf %42, %40 : vector<8x128xf32>
    %c3_27 = arith.constant 3 : index
    %c0_28 = arith.constant 0 : index
    %c0_29 = arith.constant 0 : index
    %44 = vector.load %arg5[%c3_27, %c0_28, %c0_29] : memref<31x8x128xf32, #tpu.memory_space<vmem>>, vector<1x8x128xf32>
    %45 = vector.shape_cast %44 : vector<1x8x128xf32> to vector<8x128xf32>
    %46 = vector.shape_cast %43 : vector<8x128xf32> to vector<1x8x128xf32>
    tpu.vector_store %arg5[%c3_27, %c0_28, %c0_29], %46 {strides = array<i32>} : memref<31x8x128xf32, #tpu.memory_space<vmem>>, vector<1x8x128xf32>,
    %47 = vector.extract_strided_slice %6 {offsets = [4, 0, 0], sizes = [1, 8, 128], strides = [1, 1, 1]} : vector<31x8x128xf32> to vector<1x8x128xf32>
    %48 = vector.shape_cast %47 : vector<1x8x128xf32> to vector<8x128xf32>
    %49 = vector.shape_cast %48 : vector<8x128xf32> to vector<1x8x128xf32>
    %cst_30 = arith.constant dense<0.000000e+00> : vector<8x128xf32>
    %50 = vector.multi_reduction <add>, %49, %cst_30 [0] : vector<1x8x128xf32> to vector<8x128xf32>
    %c4 = arith.constant 4 : index
    %c0_31 = arith.constant 0 : index
    %c0_32 = arith.constant 0 : index
    %51 = vector.load %arg5[%c4, %c0_31, %c0_32] : memref<31x8x128xf32, #tpu.memory_space<vmem>>, vector<1x8x128xf32>
    %52 = vector.shape_cast %51 : vector<1x8x128xf32> to vector<8x128xf32>
    %53 = arith.addf %52, %50 : vector<8x128xf32>
    %c4_33 = arith.constant 4 : index
    %c0_34 = arith.constant 0 : index
    %c0_35 = arith.constant 0 : index
    %54 = vector.load %arg5[%c4_33, %c0_34, %c0_35] : memref<31x8x128xf32, #tpu.memory_space<vmem>>, vector<1x8x128xf32>
    %55 = vector.shape_cast %54 : vector<1x8x128xf32> to vector<8x128xf32>
    %56 = vector.shape_cast %53 : vector<8x128xf32> to vector<1x8x128xf32>
    tpu.vector_store %arg5[%c4_33, %c0_34, %c0_35], %56 {strides = array<i32>} : memref<31x8x128xf32, #tpu.memory_space<vmem>>, vector<1x8x128xf32>,
    %57 = vector.extract_strided_slice %6 {offsets = [5, 0, 0], sizes = [1, 8, 128], strides = [1, 1, 1]} : vector<31x8x128xf32> to vector<1x8x128xf32>
    %58 = vector.shape_cast %57 : vector<1x8x128xf32> to vector<8x128xf32>
    %59 = vector.shape_cast %58 : vector<8x128xf32> to vector<1x8x128xf32>
    %cst_36 = arith.constant dense<0.000000e+00> : vector<8x128xf32>
    %60 = vector.multi_reduction <add>, %59, %cst_36 [0] : vector<1x8x128xf32> to vector<8x128xf32>
    %c5 = arith.constant 5 : index
    %c0_37 = arith.constant 0 : index
    %c0_38 = arith.constant 0 : index
    %61 = vector.load %arg5[%c5, %c0_37, %c0_38] : memref<31x8x128xf32, #tpu.memory_space<vmem>>, vector<1x8x128xf32>
    %62 = vector.shape_cast %61 : vector<1x8x128xf32> to vector<8x128xf32>
    %63 = arith.addf %62, %60 : vector<8x128xf32>
    %c5_39 = arith.constant 5 : index
    %c0_40 = arith.constant 0 : index
    %c0_41 = arith.constant 0 : index
    %64 = vector.load %arg5[%c5_39, %c0_40, %c0_41] : memref<31x8x128xf32, #tpu.memory_space<vmem>>, vector<1x8x128xf32>
    %65 = vector.shape_cast %64 : vector<1x8x128xf32> to vector<8x128xf32>
    %66 = vector.shape_cast %63 : vector<8x128xf32> to vector<1x8x128xf32>
    tpu.vector_store %arg5[%c5_39, %c0_40, %c0_41], %66 {strides = array<i32>} : memref<31x8x128xf32, #tpu.memory_space<vmem>>, vector<1x8x128xf32>,
    %67 = vector.extract_strided_slice %6 {offsets = [6, 0, 0], sizes = [1, 8, 128], strides = [1, 1, 1]} : vector<31x8x128xf32> to vector<1x8x128xf32>
    %68 = vector.shape_cast %67 : vector<1x8x128xf32> to vector<8x128xf32>
    %69 = vector.shape_cast %68 : vector<8x128xf32> to vector<1x8x128xf32>
    %cst_42 = arith.constant dense<0.000000e+00> : vector<8x128xf32>
    %70 = vector.multi_reduction <add>, %69, %cst_42 [0] : vector<1x8x128xf32> to vector<8x128xf32>
    %c6 = arith.constant 6 : index
    %c0_43 = arith.constant 0 : index
    %c0_44 = arith.constant 0 : index
    %71 = vector.load %arg5[%c6, %c0_43, %c0_44] : memref<31x8x128xf32, #tpu.memory_space<vmem>>, vector<1x8x128xf32>
    %72 = vector.shape_cast %71 : vector<1x8x128xf32> to vector<8x128xf32>
    %73 = arith.addf %72, %70 : vector<8x128xf32>
    %c6_45 = arith.constant 6 : index
    %c0_46 = arith.constant 0 : index
    %c0_47 = arith.constant 0 : index
    %74 = vector.load %arg5[%c6_45, %c0_46, %c0_47] : memref<31x8x128xf32, #tpu.memory_space<vmem>>, vector<1x8x128xf32>
    %75 = vector.shape_cast %74 : vector<1x8x128xf32> to vector<8x128xf32>
    %76 = vector.shape_cast %73 : vector<8x128xf32> to vector<1x8x128xf32>
    tpu.vector_store %arg5[%c6_45, %c0_46, %c0_47], %76 {strides = array<i32>} : memref<31x8x128xf32, #tpu.memory_space<vmem>>, vector<1x8x128xf32>,
    %77 = vector.extract_strided_slice %6 {offsets = [7, 0, 0], sizes = [1, 8, 128], strides = [1, 1, 1]} : vector<31x8x128xf32> to vector<1x8x128xf32>
    %78 = vector.shape_cast %77 : vector<1x8x128xf32> to vector<8x128xf32>
    %79 = vector.shape_cast %78 : vector<8x128xf32> to vector<1x8x128xf32>
    %cst_48 = arith.constant dense<0.000000e+00> : vector<8x128xf32>
    %80 = vector.multi_reduction <add>, %79, %cst_48 [0] : vector<1x8x128xf32> to vector<8x128xf32>
    %c7 = arith.constant 7 : index
    %c0_49 = arith.constant 0 : index
    %c0_50 = arith.constant 0 : index
    %81 = vector.load %arg5[%c7, %c0_49, %c0_50] : memref<31x8x128xf32, #tpu.memory_space<vmem>>, vector<1x8x128xf32>
    %82 = vector.shape_cast %81 : vector<1x8x128xf32> to vector<8x128xf32>
    %83 = arith.addf %82, %80 : vector<8x128xf32>
    %c7_51 = arith.constant 7 : index
    %c0_52 = arith.constant 0 : index
    %c0_53 = arith.constant 0 : index
    %84 = vector.load %arg5[%c7_51, %c0_52, %c0_53] : memref<31x8x128xf32, #tpu.memory_space<vmem>>, vector<1x8x128xf32>
    %85 = vector.shape_cast %84 : vector<1x8x128xf32> to vector<8x128xf32>
    %86 = vector.shape_cast %83 : vector<8x128xf32> to vector<1x8x128xf32>
    tpu.vector_store %arg5[%c7_51, %c0_52, %c0_53], %86 {strides = array<i32>} : memref<31x8x128xf32, #tpu.memory_space<vmem>>, vector<1x8x128xf32>,
    %87 = vector.extract_strided_slice %6 {offsets = [8, 0, 0], sizes = [1, 8, 128], strides = [1, 1, 1]} : vector<31x8x128xf32> to vector<1x8x128xf32>
    %88 = vector.shape_cast %87 : vector<1x8x128xf32> to vector<8x128xf32>
    %89 = vector.shape_cast %88 : vector<8x128xf32> to vector<1x8x128xf32>
    %cst_54 = arith.constant dense<0.000000e+00> : vector<8x128xf32>
    %90 = vector.multi_reduction <add>, %89, %cst_54 [0] : vector<1x8x128xf32> to vector<8x128xf32>
    %c8 = arith.constant 8 : index
    %c0_55 = arith.constant 0 : index
    %c0_56 = arith.constant 0 : index
    %91 = vector.load %arg5[%c8, %c0_55, %c0_56] : memref<31x8x128xf32, #tpu.memory_space<vmem>>, vector<1x8x128xf32>
    %92 = vector.shape_cast %91 : vector<1x8x128xf32> to vector<8x128xf32>
    %93 = arith.addf %92, %90 : vector<8x128xf32>
    %c8_57 = arith.constant 8 : index
    %c0_58 = arith.constant 0 : index
    %c0_59 = arith.constant 0 : index
    %94 = vector.load %arg5[%c8_57, %c0_58, %c0_59] : memref<31x8x128xf32, #tpu.memory_space<vmem>>, vector<1x8x128xf32>
    %95 = vector.shape_cast %94 : vector<1x8x128xf32> to vector<8x128xf32>
    %96 = vector.shape_cast %93 : vector<8x128xf32> to vector<1x8x128xf32>
    tpu.vector_store %arg5[%c8_57, %c0_58, %c0_59], %96 {strides = array<i32>} : memref<31x8x128xf32, #tpu.memory_space<vmem>>, vector<1x8x128xf32>,
    %97 = vector.extract_strided_slice %6 {offsets = [9, 0, 0], sizes = [1, 8, 128], strides = [1, 1, 1]} : vector<31x8x128xf32> to vector<1x8x128xf32>
    %98 = vector.shape_cast %97 : vector<1x8x128xf32> to vector<8x128xf32>
    %99 = vector.shape_cast %98 : vector<8x128xf32> to vector<1x8x128xf32>
    %cst_60 = arith.constant dense<0.000000e+00> : vector<8x128xf32>
    %100 = vector.multi_reduction <add>, %99, %cst_60 [0] : vector<1x8x128xf32> to vector<8x128xf32>
    %c9 = arith.constant 9 : index
    %c0_61 = arith.constant 0 : index
    %c0_62 = arith.constant 0 : index
    %101 = vector.load %arg5[%c9, %c0_61, %c0_62] : memref<31x8x128xf32, #tpu.memory_space<vmem>>, vector<1x8x128xf32>
    %102 = vector.shape_cast %101 : vector<1x8x128xf32> to vector<8x128xf32>
    %103 = arith.addf %102, %100 : vector<8x128xf32>
    %c9_63 = arith.constant 9 : index
    %c0_64 = arith.constant 0 : index
    %c0_65 = arith.constant 0 : index
    %104 = vector.load %arg5[%c9_63, %c0_64, %c0_65] : memref<31x8x128xf32, #tpu.memory_space<vmem>>, vector<1x8x128xf32>
    %105 = vector.shape_cast %104 : vector<1x8x128xf32> to vector<8x128xf32>
    %106 = vector.shape_cast %103 : vector<8x128xf32> to vector<1x8x128xf32>
    tpu.vector_store %arg5[%c9_63, %c0_64, %c0_65], %106 {strides = array<i32>} : memref<31x8x128xf32, #tpu.memory_space<vmem>>, vector<1x8x128xf32>,
    %107 = vector.extract_strided_slice %6 {offsets = [10, 0, 0], sizes = [1, 8, 128], strides = [1, 1, 1]} : vector<31x8x128xf32> to vector<1x8x128xf32>
    %108 = vector.shape_cast %107 : vector<1x8x128xf32> to vector<8x128xf32>
    %109 = vector.shape_cast %108 : vector<8x128xf32> to vector<1x8x128xf32>
    %cst_66 = arith.constant dense<0.000000e+00> : vector<8x128xf32>
    %110 = vector.multi_reduction <add>, %109, %cst_66 [0] : vector<1x8x128xf32> to vector<8x128xf32>
    %c10 = arith.constant 10 : index
    %c0_67 = arith.constant 0 : index
    %c0_68 = arith.constant 0 : index
    %111 = vector.load %arg5[%c10, %c0_67, %c0_68] : memref<31x8x128xf32, #tpu.memory_space<vmem>>, vector<1x8x128xf32>
    %112 = vector.shape_cast %111 : vector<1x8x128xf32> to vector<8x128xf32>
    %113 = arith.addf %112, %110 : vector<8x128xf32>
    %c10_69 = arith.constant 10 : index
    %c0_70 = arith.constant 0 : index
    %c0_71 = arith.constant 0 : index
    %114 = vector.load %arg5[%c10_69, %c0_70, %c0_71] : memref<31x8x128xf32, #tpu.memory_space<vmem>>, vector<1x8x128xf32>
    %115 = vector.shape_cast %114 : vector<1x8x128xf32> to vector<8x128xf32>
    %116 = vector.shape_cast %113 : vector<8x128xf32> to vector<1x8x128xf32>
    tpu.vector_store %arg5[%c10_69, %c0_70, %c0_71], %116 {strides = array<i32>} : memref<31x8x128xf32, #tpu.memory_space<vmem>>, vector<1x8x128xf32>,
    %117 = vector.extract_strided_slice %6 {offsets = [11, 0, 0], sizes = [1, 8, 128], strides = [1, 1, 1]} : vector<31x8x128xf32> to vector<1x8x128xf32>
    %118 = vector.shape_cast %117 : vector<1x8x128xf32> to vector<8x128xf32>
    %119 = vector.shape_cast %118 : vector<8x128xf32> to vector<1x8x128xf32>
    %cst_72 = arith.constant dense<0.000000e+00> : vector<8x128xf32>
    %120 = vector.multi_reduction <add>, %119, %cst_72 [0] : vector<1x8x128xf32> to vector<8x128xf32>
    %c11 = arith.constant 11 : index
    %c0_73 = arith.constant 0 : index
    %c0_74 = arith.constant 0 : index
    %121 = vector.load %arg5[%c11, %c0_73, %c0_74] : memref<31x8x128xf32, #tpu.memory_space<vmem>>, vector<1x8x128xf32>
    %122 = vector.shape_cast %121 : vector<1x8x128xf32> to vector<8x128xf32>
    %123 = arith.addf %122, %120 : vector<8x128xf32>
    %c11_75 = arith.constant 11 : index
    %c0_76 = arith.constant 0 : index
    %c0_77 = arith.constant 0 : index
    %124 = vector.load %arg5[%c11_75, %c0_76, %c0_77] : memref<31x8x128xf32, #tpu.memory_space<vmem>>, vector<1x8x128xf32>
    %125 = vector.shape_cast %124 : vector<1x8x128xf32> to vector<8x128xf32>
    %126 = vector.shape_cast %123 : vector<8x128xf32> to vector<1x8x128xf32>
    tpu.vector_store %arg5[%c11_75, %c0_76, %c0_77], %126 {strides = array<i32>} : memref<31x8x128xf32, #tpu.memory_space<vmem>>, vector<1x8x128xf32>,
    %127 = vector.extract_strided_slice %6 {offsets = [12, 0, 0], sizes = [1, 8, 128], strides = [1, 1, 1]} : vector<31x8x128xf32> to vector<1x8x128xf32>
    %128 = vector.shape_cast %127 : vector<1x8x128xf32> to vector<8x128xf32>
    %129 = vector.shape_cast %128 : vector<8x128xf32> to vector<1x8x128xf32>
    %cst_78 = arith.constant dense<0.000000e+00> : vector<8x128xf32>
    %130 = vector.multi_reduction <add>, %129, %cst_78 [0] : vector<1x8x128xf32> to vector<8x128xf32>
    %c12 = arith.constant 12 : index
    %c0_79 = arith.constant 0 : index
    %c0_80 = arith.constant 0 : index
    %131 = vector.load %arg5[%c12, %c0_79, %c0_80] : memref<31x8x128xf32, #tpu.memory_space<vmem>>, vector<1x8x128xf32>
    %132 = vector.shape_cast %131 : vector<1x8x128xf32> to vector<8x128xf32>
    %133 = arith.addf %132, %130 : vector<8x128xf32>
    %c12_81 = arith.constant 12 : index
    %c0_82 = arith.constant 0 : index
    %c0_83 = arith.constant 0 : index
    %134 = vector.load %arg5[%c12_81, %c0_82, %c0_83] : memref<31x8x128xf32, #tpu.memory_space<vmem>>, vector<1x8x128xf32>
    %135 = vector.shape_cast %134 : vector<1x8x128xf32> to vector<8x128xf32>
    %136 = vector.shape_cast %133 : vector<8x128xf32> to vector<1x8x128xf32>
    tpu.vector_store %arg5[%c12_81, %c0_82, %c0_83], %136 {strides = array<i32>} : memref<31x8x128xf32, #tpu.memory_space<vmem>>, vector<1x8x128xf32>,
    %137 = vector.extract_strided_slice %6 {offsets = [13, 0, 0], sizes = [1, 8, 128], strides = [1, 1, 1]} : vector<31x8x128xf32> to vector<1x8x128xf32>
    %138 = vector.shape_cast %137 : vector<1x8x128xf32> to vector<8x128xf32>
    %139 = vector.shape_cast %138 : vector<8x128xf32> to vector<1x8x128xf32>
    %cst_84 = arith.constant dense<0.000000e+00> : vector<8x128xf32>
    %140 = vector.multi_reduction <add>, %139, %cst_84 [0] : vector<1x8x128xf32> to vector<8x128xf32>
    %c13 = arith.constant 13 : index
    %c0_85 = arith.constant 0 : index
    %c0_86 = arith.constant 0 : index
    %141 = vector.load %arg5[%c13, %c0_85, %c0_86] : memref<31x8x128xf32, #tpu.memory_space<vmem>>, vector<1x8x128xf32>
    %142 = vector.shape_cast %141 : vector<1x8x128xf32> to vector<8x128xf32>
    %143 = arith.addf %142, %140 : vector<8x128xf32>
    %c13_87 = arith.constant 13 : index
    %c0_88 = arith.constant 0 : index
    %c0_89 = arith.constant 0 : index
    %144 = vector.load %arg5[%c13_87, %c0_88, %c0_89] : memref<31x8x128xf32, #tpu.memory_space<vmem>>, vector<1x8x128xf32>
    %145 = vector.shape_cast %144 : vector<1x8x128xf32> to vector<8x128xf32>
    %146 = vector.shape_cast %143 : vector<8x128xf32> to vector<1x8x128xf32>
    tpu.vector_store %arg5[%c13_87, %c0_88, %c0_89], %146 {strides = array<i32>} : memref<31x8x128xf32, #tpu.memory_space<vmem>>, vector<1x8x128xf32>,
    %147 = vector.extract_strided_slice %6 {offsets = [14, 0, 0], sizes = [1, 8, 128], strides = [1, 1, 1]} : vector<31x8x128xf32> to vector<1x8x128xf32>
    %148 = vector.shape_cast %147 : vector<1x8x128xf32> to vector<8x128xf32>
    %149 = vector.shape_cast %148 : vector<8x128xf32> to vector<1x8x128xf32>
    %cst_90 = arith.constant dense<0.000000e+00> : vector<8x128xf32>
    %150 = vector.multi_reduction <add>, %149, %cst_90 [0] : vector<1x8x128xf32> to vector<8x128xf32>
    %c14 = arith.constant 14 : index
    %c0_91 = arith.constant 0 : index
    %c0_92 = arith.constant 0 : index
    %151 = vector.load %arg5[%c14, %c0_91, %c0_92] : memref<31x8x128xf32, #tpu.memory_space<vmem>>, vector<1x8x128xf32>
    %152 = vector.shape_cast %151 : vector<1x8x128xf32> to vector<8x128xf32>
    %153 = arith.addf %152, %150 : vector<8x128xf32>
    %c14_93 = arith.constant 14 : index
    %c0_94 = arith.constant 0 : index
    %c0_95 = arith.constant 0 : index
    %154 = vector.load %arg5[%c14_93, %c0_94, %c0_95] : memref<31x8x128xf32, #tpu.memory_space<vmem>>, vector<1x8x128xf32>
    %155 = vector.shape_cast %154 : vector<1x8x128xf32> to vector<8x128xf32>
    %156 = vector.shape_cast %153 : vector<8x128xf32> to vector<1x8x128xf32>
    tpu.vector_store %arg5[%c14_93, %c0_94, %c0_95], %156 {strides = array<i32>} : memref<31x8x128xf32, #tpu.memory_space<vmem>>, vector<1x8x128xf32>,
    %157 = vector.extract_strided_slice %6 {offsets = [15, 0, 0], sizes = [1, 8, 128], strides = [1, 1, 1]} : vector<31x8x128xf32> to vector<1x8x128xf32>
    %158 = vector.shape_cast %157 : vector<1x8x128xf32> to vector<8x128xf32>
    %159 = vector.shape_cast %158 : vector<8x128xf32> to vector<1x8x128xf32>
    %cst_96 = arith.constant dense<0.000000e+00> : vector<8x128xf32>
    %160 = vector.multi_reduction <add>, %159, %cst_96 [0] : vector<1x8x128xf32> to vector<8x128xf32>
    %c15 = arith.constant 15 : index
    %c0_97 = arith.constant 0 : index
    %c0_98 = arith.constant 0 : index
    %161 = vector.load %arg5[%c15, %c0_97, %c0_98] : memref<31x8x128xf32, #tpu.memory_space<vmem>>, vector<1x8x128xf32>
    %162 = vector.shape_cast %161 : vector<1x8x128xf32> to vector<8x128xf32>
    %163 = arith.addf %162, %160 : vector<8x128xf32>
    %c15_99 = arith.constant 15 : index
    %c0_100 = arith.constant 0 : index
    %c0_101 = arith.constant 0 : index
    %164 = vector.load %arg5[%c15_99, %c0_100, %c0_101] : memref<31x8x128xf32, #tpu.memory_space<vmem>>, vector<1x8x128xf32>
    %165 = vector.shape_cast %164 : vector<1x8x128xf32> to vector<8x128xf32>
    %166 = vector.shape_cast %163 : vector<8x128xf32> to vector<1x8x128xf32>
    tpu.vector_store %arg5[%c15_99, %c0_100, %c0_101], %166 {strides = array<i32>} : memref<31x8x128xf32, #tpu.memory_space<vmem>>, vector<1x8x128xf32>,
    %167 = vector.extract_strided_slice %6 {offsets = [16, 0, 0], sizes = [1, 8, 128], strides = [1, 1, 1]} : vector<31x8x128xf32> to vector<1x8x128xf32>
    %168 = vector.shape_cast %167 : vector<1x8x128xf32> to vector<8x128xf32>
    %169 = vector.shape_cast %168 : vector<8x128xf32> to vector<1x8x128xf32>
    %cst_102 = arith.constant dense<0.000000e+00> : vector<8x128xf32>
    %170 = vector.multi_reduction <add>, %169, %cst_102 [0] : vector<1x8x128xf32> to vector<8x128xf32>
    %c16 = arith.constant 16 : index
    %c0_103 = arith.constant 0 : index
    %c0_104 = arith.constant 0 : index
    %171 = vector.load %arg5[%c16, %c0_103, %c0_104] : memref<31x8x128xf32, #tpu.memory_space<vmem>>, vector<1x8x128xf32>
    %172 = vector.shape_cast %171 : vector<1x8x128xf32> to vector<8x128xf32>
    %173 = arith.addf %172, %170 : vector<8x128xf32>
    %c16_105 = arith.constant 16 : index
    %c0_106 = arith.constant 0 : index
    %c0_107 = arith.constant 0 : index
    %174 = vector.load %arg5[%c16_105, %c0_106, %c0_107] : memref<31x8x128xf32, #tpu.memory_space<vmem>>, vector<1x8x128xf32>
    %175 = vector.shape_cast %174 : vector<1x8x128xf32> to vector<8x128xf32>
    %176 = vector.shape_cast %173 : vector<8x128xf32> to vector<1x8x128xf32>
    tpu.vector_store %arg5[%c16_105, %c0_106, %c0_107], %176 {strides = array<i32>} : memref<31x8x128xf32, #tpu.memory_space<vmem>>, vector<1x8x128xf32>,
    %177 = vector.extract_strided_slice %6 {offsets = [17, 0, 0], sizes = [1, 8, 128], strides = [1, 1, 1]} : vector<31x8x128xf32> to vector<1x8x128xf32>
    %178 = vector.shape_cast %177 : vector<1x8x128xf32> to vector<8x128xf32>
    %179 = vector.shape_cast %178 : vector<8x128xf32> to vector<1x8x128xf32>
    %cst_108 = arith.constant dense<0.000000e+00> : vector<8x128xf32>
    %180 = vector.multi_reduction <add>, %179, %cst_108 [0] : vector<1x8x128xf32> to vector<8x128xf32>
    %c17 = arith.constant 17 : index
    %c0_109 = arith.constant 0 : index
    %c0_110 = arith.constant 0 : index
    %181 = vector.load %arg5[%c17, %c0_109, %c0_110] : memref<31x8x128xf32, #tpu.memory_space<vmem>>, vector<1x8x128xf32>
    %182 = vector.shape_cast %181 : vector<1x8x128xf32> to vector<8x128xf32>
    %183 = arith.addf %182, %180 : vector<8x128xf32>
    %c17_111 = arith.constant 17 : index
    %c0_112 = arith.constant 0 : index
    %c0_113 = arith.constant 0 : index
    %184 = vector.load %arg5[%c17_111, %c0_112, %c0_113] : memref<31x8x128xf32, #tpu.memory_space<vmem>>, vector<1x8x128xf32>
    %185 = vector.shape_cast %184 : vector<1x8x128xf32> to vector<8x128xf32>
    %186 = vector.shape_cast %183 : vector<8x128xf32> to vector<1x8x128xf32>
    tpu.vector_store %arg5[%c17_111, %c0_112, %c0_113], %186 {strides = array<i32>} : memref<31x8x128xf32, #tpu.memory_space<vmem>>, vector<1x8x128xf32>,
    %187 = vector.extract_strided_slice %6 {offsets = [18, 0, 0], sizes = [1, 8, 128], strides = [1, 1, 1]} : vector<31x8x128xf32> to vector<1x8x128xf32>
    %188 = vector.shape_cast %187 : vector<1x8x128xf32> to vector<8x128xf32>
    %189 = vector.shape_cast %188 : vector<8x128xf32> to vector<1x8x128xf32>
    %cst_114 = arith.constant dense<0.000000e+00> : vector<8x128xf32>
    %190 = vector.multi_reduction <add>, %189, %cst_114 [0] : vector<1x8x128xf32> to vector<8x128xf32>
    %c18 = arith.constant 18 : index
    %c0_115 = arith.constant 0 : index
    %c0_116 = arith.constant 0 : index
    %191 = vector.load %arg5[%c18, %c0_115, %c0_116] : memref<31x8x128xf32, #tpu.memory_space<vmem>>, vector<1x8x128xf32>
    %192 = vector.shape_cast %191 : vector<1x8x128xf32> to vector<8x128xf32>
    %193 = arith.addf %192, %190 : vector<8x128xf32>
    %c18_117 = arith.constant 18 : index
    %c0_118 = arith.constant 0 : index
    %c0_119 = arith.constant 0 : index
    %194 = vector.load %arg5[%c18_117, %c0_118, %c0_119] : memref<31x8x128xf32, #tpu.memory_space<vmem>>, vector<1x8x128xf32>
    %195 = vector.shape_cast %194 : vector<1x8x128xf32> to vector<8x128xf32>
    %196 = vector.shape_cast %193 : vector<8x128xf32> to vector<1x8x128xf32>
    tpu.vector_store %arg5[%c18_117, %c0_118, %c0_119], %196 {strides = array<i32>} : memref<31x8x128xf32, #tpu.memory_space<vmem>>, vector<1x8x128xf32>,
    %197 = vector.extract_strided_slice %6 {offsets = [19, 0, 0], sizes = [1, 8, 128], strides = [1, 1, 1]} : vector<31x8x128xf32> to vector<1x8x128xf32>
    %198 = vector.shape_cast %197 : vector<1x8x128xf32> to vector<8x128xf32>
    %199 = vector.shape_cast %198 : vector<8x128xf32> to vector<1x8x128xf32>
    %cst_120 = arith.constant dense<0.000000e+00> : vector<8x128xf32>
    %200 = vector.multi_reduction <add>, %199, %cst_120 [0] : vector<1x8x128xf32> to vector<8x128xf32>
    %c19 = arith.constant 19 : index
    %c0_121 = arith.constant 0 : index
    %c0_122 = arith.constant 0 : index
    %201 = vector.load %arg5[%c19, %c0_121, %c0_122] : memref<31x8x128xf32, #tpu.memory_space<vmem>>, vector<1x8x128xf32>
    %202 = vector.shape_cast %201 : vector<1x8x128xf32> to vector<8x128xf32>
    %203 = arith.addf %202, %200 : vector<8x128xf32>
    %c19_123 = arith.constant 19 : index
    %c0_124 = arith.constant 0 : index
    %c0_125 = arith.constant 0 : index
    %204 = vector.load %arg5[%c19_123, %c0_124, %c0_125] : memref<31x8x128xf32, #tpu.memory_space<vmem>>, vector<1x8x128xf32>
    %205 = vector.shape_cast %204 : vector<1x8x128xf32> to vector<8x128xf32>
    %206 = vector.shape_cast %203 : vector<8x128xf32> to vector<1x8x128xf32>
    tpu.vector_store %arg5[%c19_123, %c0_124, %c0_125], %206 {strides = array<i32>} : memref<31x8x128xf32, #tpu.memory_space<vmem>>, vector<1x8x128xf32>,
    %207 = vector.extract_strided_slice %6 {offsets = [20, 0, 0], sizes = [1, 8, 128], strides = [1, 1, 1]} : vector<31x8x128xf32> to vector<1x8x128xf32>
    %208 = vector.shape_cast %207 : vector<1x8x128xf32> to vector<8x128xf32>
    %209 = vector.shape_cast %208 : vector<8x128xf32> to vector<1x8x128xf32>
    %cst_126 = arith.constant dense<0.000000e+00> : vector<8x128xf32>
    %210 = vector.multi_reduction <add>, %209, %cst_126 [0] : vector<1x8x128xf32> to vector<8x128xf32>
    %c20 = arith.constant 20 : index
    %c0_127 = arith.constant 0 : index
    %c0_128 = arith.constant 0 : index
    %211 = vector.load %arg5[%c20, %c0_127, %c0_128] : memref<31x8x128xf32, #tpu.memory_space<vmem>>, vector<1x8x128xf32>
    %212 = vector.shape_cast %211 : vector<1x8x128xf32> to vector<8x128xf32>
    %213 = arith.addf %212, %210 : vector<8x128xf32>
    %c20_129 = arith.constant 20 : index
    %c0_130 = arith.constant 0 : index
    %c0_131 = arith.constant 0 : index
    %214 = vector.load %arg5[%c20_129, %c0_130, %c0_131] : memref<31x8x128xf32, #tpu.memory_space<vmem>>, vector<1x8x128xf32>
    %215 = vector.shape_cast %214 : vector<1x8x128xf32> to vector<8x128xf32>
    %216 = vector.shape_cast %213 : vector<8x128xf32> to vector<1x8x128xf32>
    tpu.vector_store %arg5[%c20_129, %c0_130, %c0_131], %216 {strides = array<i32>} : memref<31x8x128xf32, #tpu.memory_space<vmem>>, vector<1x8x128xf32>,
    %217 = vector.extract_strided_slice %6 {offsets = [21, 0, 0], sizes = [1, 8, 128], strides = [1, 1, 1]} : vector<31x8x128xf32> to vector<1x8x128xf32>
    %218 = vector.shape_cast %217 : vector<1x8x128xf32> to vector<8x128xf32>
    %219 = vector.shape_cast %218 : vector<8x128xf32> to vector<1x8x128xf32>
    %cst_132 = arith.constant dense<0.000000e+00> : vector<8x128xf32>
    %220 = vector.multi_reduction <add>, %219, %cst_132 [0] : vector<1x8x128xf32> to vector<8x128xf32>
    %c21 = arith.constant 21 : index
    %c0_133 = arith.constant 0 : index
    %c0_134 = arith.constant 0 : index
    %221 = vector.load %arg5[%c21, %c0_133, %c0_134] : memref<31x8x128xf32, #tpu.memory_space<vmem>>, vector<1x8x128xf32>
    %222 = vector.shape_cast %221 : vector<1x8x128xf32> to vector<8x128xf32>
    %223 = arith.addf %222, %220 : vector<8x128xf32>
    %c21_135 = arith.constant 21 : index
    %c0_136 = arith.constant 0 : index
    %c0_137 = arith.constant 0 : index
    %224 = vector.load %arg5[%c21_135, %c0_136, %c0_137] : memref<31x8x128xf32, #tpu.memory_space<vmem>>, vector<1x8x128xf32>
    %225 = vector.shape_cast %224 : vector<1x8x128xf32> to vector<8x128xf32>
    %226 = vector.shape_cast %223 : vector<8x128xf32> to vector<1x8x128xf32>
    tpu.vector_store %arg5[%c21_135, %c0_136, %c0_137], %226 {strides = array<i32>} : memref<31x8x128xf32, #tpu.memory_space<vmem>>, vector<1x8x128xf32>,
    %227 = vector.extract_strided_slice %6 {offsets = [22, 0, 0], sizes = [1, 8, 128], strides = [1, 1, 1]} : vector<31x8x128xf32> to vector<1x8x128xf32>
    %228 = vector.shape_cast %227 : vector<1x8x128xf32> to vector<8x128xf32>
    %229 = vector.shape_cast %228 : vector<8x128xf32> to vector<1x8x128xf32>
    %cst_138 = arith.constant dense<0.000000e+00> : vector<8x128xf32>
    %230 = vector.multi_reduction <add>, %229, %cst_138 [0] : vector<1x8x128xf32> to vector<8x128xf32>
    %c22 = arith.constant 22 : index
    %c0_139 = arith.constant 0 : index
    %c0_140 = arith.constant 0 : index
    %231 = vector.load %arg5[%c22, %c0_139, %c0_140] : memref<31x8x128xf32, #tpu.memory_space<vmem>>, vector<1x8x128xf32>
    %232 = vector.shape_cast %231 : vector<1x8x128xf32> to vector<8x128xf32>
    %233 = arith.addf %232, %230 : vector<8x128xf32>
    %c22_141 = arith.constant 22 : index
    %c0_142 = arith.constant 0 : index
    %c0_143 = arith.constant 0 : index
    %234 = vector.load %arg5[%c22_141, %c0_142, %c0_143] : memref<31x8x128xf32, #tpu.memory_space<vmem>>, vector<1x8x128xf32>
    %235 = vector.shape_cast %234 : vector<1x8x128xf32> to vector<8x128xf32>
    %236 = vector.shape_cast %233 : vector<8x128xf32> to vector<1x8x128xf32>
    tpu.vector_store %arg5[%c22_141, %c0_142, %c0_143], %236 {strides = array<i32>} : memref<31x8x128xf32, #tpu.memory_space<vmem>>, vector<1x8x128xf32>,
    %237 = vector.extract_strided_slice %6 {offsets = [23, 0, 0], sizes = [1, 8, 128], strides = [1, 1, 1]} : vector<31x8x128xf32> to vector<1x8x128xf32>
    %238 = vector.shape_cast %237 : vector<1x8x128xf32> to vector<8x128xf32>
    %239 = vector.shape_cast %238 : vector<8x128xf32> to vector<1x8x128xf32>
    %cst_144 = arith.constant dense<0.000000e+00> : vector<8x128xf32>
    %240 = vector.multi_reduction <add>, %239, %cst_144 [0] : vector<1x8x128xf32> to vector<8x128xf32>
    %c23 = arith.constant 23 : index
    %c0_145 = arith.constant 0 : index
    %c0_146 = arith.constant 0 : index
    %241 = vector.load %arg5[%c23, %c0_145, %c0_146] : memref<31x8x128xf32, #tpu.memory_space<vmem>>, vector<1x8x128xf32>
    %242 = vector.shape_cast %241 : vector<1x8x128xf32> to vector<8x128xf32>
    %243 = arith.addf %242, %240 : vector<8x128xf32>
    %c23_147 = arith.constant 23 : index
    %c0_148 = arith.constant 0 : index
    %c0_149 = arith.constant 0 : index
    %244 = vector.load %arg5[%c23_147, %c0_148, %c0_149] : memref<31x8x128xf32, #tpu.memory_space<vmem>>, vector<1x8x128xf32>
    %245 = vector.shape_cast %244 : vector<1x8x128xf32> to vector<8x128xf32>
    %246 = vector.shape_cast %243 : vector<8x128xf32> to vector<1x8x128xf32>
    tpu.vector_store %arg5[%c23_147, %c0_148, %c0_149], %246 {strides = array<i32>} : memref<31x8x128xf32, #tpu.memory_space<vmem>>, vector<1x8x128xf32>,
    %247 = vector.extract_strided_slice %6 {offsets = [24, 0, 0], sizes = [1, 8, 128], strides = [1, 1, 1]} : vector<31x8x128xf32> to vector<1x8x128xf32>
    %248 = vector.shape_cast %247 : vector<1x8x128xf32> to vector<8x128xf32>
    %249 = vector.shape_cast %248 : vector<8x128xf32> to vector<1x8x128xf32>
    %cst_150 = arith.constant dense<0.000000e+00> : vector<8x128xf32>
    %250 = vector.multi_reduction <add>, %249, %cst_150 [0] : vector<1x8x128xf32> to vector<8x128xf32>
    %c24 = arith.constant 24 : index
    %c0_151 = arith.constant 0 : index
    %c0_152 = arith.constant 0 : index
    %251 = vector.load %arg5[%c24, %c0_151, %c0_152] : memref<31x8x128xf32, #tpu.memory_space<vmem>>, vector<1x8x128xf32>
    %252 = vector.shape_cast %251 : vector<1x8x128xf32> to vector<8x128xf32>
    %253 = arith.addf %252, %250 : vector<8x128xf32>
    %c24_153 = arith.constant 24 : index
    %c0_154 = arith.constant 0 : index
    %c0_155 = arith.constant 0 : index
    %254 = vector.load %arg5[%c24_153, %c0_154, %c0_155] : memref<31x8x128xf32, #tpu.memory_space<vmem>>, vector<1x8x128xf32>
    %255 = vector.shape_cast %254 : vector<1x8x128xf32> to vector<8x128xf32>
    %256 = vector.shape_cast %253 : vector<8x128xf32> to vector<1x8x128xf32>
    tpu.vector_store %arg5[%c24_153, %c0_154, %c0_155], %256 {strides = array<i32>} : memref<31x8x128xf32, #tpu.memory_space<vmem>>, vector<1x8x128xf32>,
    %257 = vector.extract_strided_slice %6 {offsets = [25, 0, 0], sizes = [1, 8, 128], strides = [1, 1, 1]} : vector<31x8x128xf32> to vector<1x8x128xf32>
    %258 = vector.shape_cast %257 : vector<1x8x128xf32> to vector<8x128xf32>
    %259 = vector.shape_cast %258 : vector<8x128xf32> to vector<1x8x128xf32>
    %cst_156 = arith.constant dense<0.000000e+00> : vector<8x128xf32>
    %260 = vector.multi_reduction <add>, %259, %cst_156 [0] : vector<1x8x128xf32> to vector<8x128xf32>
    %c25 = arith.constant 25 : index
    %c0_157 = arith.constant 0 : index
    %c0_158 = arith.constant 0 : index
    %261 = vector.load %arg5[%c25, %c0_157, %c0_158] : memref<31x8x128xf32, #tpu.memory_space<vmem>>, vector<1x8x128xf32>
    %262 = vector.shape_cast %261 : vector<1x8x128xf32> to vector<8x128xf32>
    %263 = arith.addf %262, %260 : vector<8x128xf32>
    %c25_159 = arith.constant 25 : index
    %c0_160 = arith.constant 0 : index
    %c0_161 = arith.constant 0 : index
    %264 = vector.load %arg5[%c25_159, %c0_160, %c0_161] : memref<31x8x128xf32, #tpu.memory_space<vmem>>, vector<1x8x128xf32>
    %265 = vector.shape_cast %264 : vector<1x8x128xf32> to vector<8x128xf32>
    %266 = vector.shape_cast %263 : vector<8x128xf32> to vector<1x8x128xf32>
    tpu.vector_store %arg5[%c25_159, %c0_160, %c0_161], %266 {strides = array<i32>} : memref<31x8x128xf32, #tpu.memory_space<vmem>>, vector<1x8x128xf32>,
    %267 = vector.extract_strided_slice %6 {offsets = [26, 0, 0], sizes = [1, 8, 128], strides = [1, 1, 1]} : vector<31x8x128xf32> to vector<1x8x128xf32>
    %268 = vector.shape_cast %267 : vector<1x8x128xf32> to vector<8x128xf32>
    %269 = vector.shape_cast %268 : vector<8x128xf32> to vector<1x8x128xf32>
    %cst_162 = arith.constant dense<0.000000e+00> : vector<8x128xf32>
    %270 = vector.multi_reduction <add>, %269, %cst_162 [0] : vector<1x8x128xf32> to vector<8x128xf32>
    %c26 = arith.constant 26 : index
    %c0_163 = arith.constant 0 : index
    %c0_164 = arith.constant 0 : index
    %271 = vector.load %arg5[%c26, %c0_163, %c0_164] : memref<31x8x128xf32, #tpu.memory_space<vmem>>, vector<1x8x128xf32>
    %272 = vector.shape_cast %271 : vector<1x8x128xf32> to vector<8x128xf32>
    %273 = arith.addf %272, %270 : vector<8x128xf32>
    %c26_165 = arith.constant 26 : index
    %c0_166 = arith.constant 0 : index
    %c0_167 = arith.constant 0 : index
    %274 = vector.load %arg5[%c26_165, %c0_166, %c0_167] : memref<31x8x128xf32, #tpu.memory_space<vmem>>, vector<1x8x128xf32>
    %275 = vector.shape_cast %274 : vector<1x8x128xf32> to vector<8x128xf32>
    %276 = vector.shape_cast %273 : vector<8x128xf32> to vector<1x8x128xf32>
    tpu.vector_store %arg5[%c26_165, %c0_166, %c0_167], %276 {strides = array<i32>} : memref<31x8x128xf32, #tpu.memory_space<vmem>>, vector<1x8x128xf32>,
    %277 = vector.extract_strided_slice %6 {offsets = [27, 0, 0], sizes = [1, 8, 128], strides = [1, 1, 1]} : vector<31x8x128xf32> to vector<1x8x128xf32>
    %278 = vector.shape_cast %277 : vector<1x8x128xf32> to vector<8x128xf32>
    %279 = vector.shape_cast %278 : vector<8x128xf32> to vector<1x8x128xf32>
    %cst_168 = arith.constant dense<0.000000e+00> : vector<8x128xf32>
    %280 = vector.multi_reduction <add>, %279, %cst_168 [0] : vector<1x8x128xf32> to vector<8x128xf32>
    %c27 = arith.constant 27 : index
    %c0_169 = arith.constant 0 : index
    %c0_170 = arith.constant 0 : index
    %281 = vector.load %arg5[%c27, %c0_169, %c0_170] : memref<31x8x128xf32, #tpu.memory_space<vmem>>, vector<1x8x128xf32>
    %282 = vector.shape_cast %281 : vector<1x8x128xf32> to vector<8x128xf32>
    %283 = arith.addf %282, %280 : vector<8x128xf32>
    %c27_171 = arith.constant 27 : index
    %c0_172 = arith.constant 0 : index
    %c0_173 = arith.constant 0 : index
    %284 = vector.load %arg5[%c27_171, %c0_172, %c0_173] : memref<31x8x128xf32, #tpu.memory_space<vmem>>, vector<1x8x128xf32>
    %285 = vector.shape_cast %284 : vector<1x8x128xf32> to vector<8x128xf32>
    %286 = vector.shape_cast %283 : vector<8x128xf32> to vector<1x8x128xf32>
    tpu.vector_store %arg5[%c27_171, %c0_172, %c0_173], %286 {strides = array<i32>} : memref<31x8x128xf32, #tpu.memory_space<vmem>>, vector<1x8x128xf32>,
    %287 = vector.extract_strided_slice %6 {offsets = [28, 0, 0], sizes = [1, 8, 128], strides = [1, 1, 1]} : vector<31x8x128xf32> to vector<1x8x128xf32>
    %288 = vector.shape_cast %287 : vector<1x8x128xf32> to vector<8x128xf32>
    %289 = vector.shape_cast %288 : vector<8x128xf32> to vector<1x8x128xf32>
    %cst_174 = arith.constant dense<0.000000e+00> : vector<8x128xf32>
    %290 = vector.multi_reduction <add>, %289, %cst_174 [0] : vector<1x8x128xf32> to vector<8x128xf32>
    %c28 = arith.constant 28 : index
    %c0_175 = arith.constant 0 : index
    %c0_176 = arith.constant 0 : index
    %291 = vector.load %arg5[%c28, %c0_175, %c0_176] : memref<31x8x128xf32, #tpu.memory_space<vmem>>, vector<1x8x128xf32>
    %292 = vector.shape_cast %291 : vector<1x8x128xf32> to vector<8x128xf32>
    %293 = arith.addf %292, %290 : vector<8x128xf32>
    %c28_177 = arith.constant 28 : index
    %c0_178 = arith.constant 0 : index
    %c0_179 = arith.constant 0 : index
    %294 = vector.load %arg5[%c28_177, %c0_178, %c0_179] : memref<31x8x128xf32, #tpu.memory_space<vmem>>, vector<1x8x128xf32>
    %295 = vector.shape_cast %294 : vector<1x8x128xf32> to vector<8x128xf32>
    %296 = vector.shape_cast %293 : vector<8x128xf32> to vector<1x8x128xf32>
    tpu.vector_store %arg5[%c28_177, %c0_178, %c0_179], %296 {strides = array<i32>} : memref<31x8x128xf32, #tpu.memory_space<vmem>>, vector<1x8x128xf32>,
    %297 = vector.extract_strided_slice %6 {offsets = [29, 0, 0], sizes = [1, 8, 128], strides = [1, 1, 1]} : vector<31x8x128xf32> to vector<1x8x128xf32>
    %298 = vector.shape_cast %297 : vector<1x8x128xf32> to vector<8x128xf32>
    %299 = vector.shape_cast %298 : vector<8x128xf32> to vector<1x8x128xf32>
    %cst_180 = arith.constant dense<0.000000e+00> : vector<8x128xf32>
    %300 = vector.multi_reduction <add>, %299, %cst_180 [0] : vector<1x8x128xf32> to vector<8x128xf32>
    %c29 = arith.constant 29 : index
    %c0_181 = arith.constant 0 : index
    %c0_182 = arith.constant 0 : index
    %301 = vector.load %arg5[%c29, %c0_181, %c0_182] : memref<31x8x128xf32, #tpu.memory_space<vmem>>, vector<1x8x128xf32>
    %302 = vector.shape_cast %301 : vector<1x8x128xf32> to vector<8x128xf32>
    %303 = arith.addf %302, %300 : vector<8x128xf32>
    %c29_183 = arith.constant 29 : index
    %c0_184 = arith.constant 0 : index
    %c0_185 = arith.constant 0 : index
    %304 = vector.load %arg5[%c29_183, %c0_184, %c0_185] : memref<31x8x128xf32, #tpu.memory_space<vmem>>, vector<1x8x128xf32>
    %305 = vector.shape_cast %304 : vector<1x8x128xf32> to vector<8x128xf32>
    %306 = vector.shape_cast %303 : vector<8x128xf32> to vector<1x8x128xf32>
    tpu.vector_store %arg5[%c29_183, %c0_184, %c0_185], %306 {strides = array<i32>} : memref<31x8x128xf32, #tpu.memory_space<vmem>>, vector<1x8x128xf32>,
    %307 = vector.extract_strided_slice %6 {offsets = [30, 0, 0], sizes = [1, 8, 128], strides = [1, 1, 1]} : vector<31x8x128xf32> to vector<1x8x128xf32>
    %308 = vector.shape_cast %307 : vector<1x8x128xf32> to vector<8x128xf32>
    %309 = vector.shape_cast %308 : vector<8x128xf32> to vector<1x8x128xf32>
    %cst_186 = arith.constant dense<0.000000e+00> : vector<8x128xf32>
    %310 = vector.multi_reduction <add>, %309, %cst_186 [0] : vector<1x8x128xf32> to vector<8x128xf32>
    %c30 = arith.constant 30 : index
    %c0_187 = arith.constant 0 : index
    %c0_188 = arith.constant 0 : index
    %311 = vector.load %arg5[%c30, %c0_187, %c0_188] : memref<31x8x128xf32, #tpu.memory_space<vmem>>, vector<1x8x128xf32>
    %312 = vector.shape_cast %311 : vector<1x8x128xf32> to vector<8x128xf32>
    %313 = arith.addf %312, %310 : vector<8x128xf32>
    %c30_189 = arith.constant 30 : index
    %c0_190 = arith.constant 0 : index
    %c0_191 = arith.constant 0 : index
    %314 = vector.load %arg5[%c30_189, %c0_190, %c0_191] : memref<31x8x128xf32, #tpu.memory_space<vmem>>, vector<1x8x128xf32>
    %315 = vector.shape_cast %314 : vector<1x8x128xf32> to vector<8x128xf32>
    %316 = vector.shape_cast %313 : vector<8x128xf32> to vector<1x8x128xf32>
    tpu.vector_store %arg5[%c30_189, %c0_190, %c0_191], %316 {strides = array<i32>} : memref<31x8x128xf32, #tpu.memory_space<vmem>>, vector<1x8x128xf32>,
    %c0_i32_192 = arith.constant 0 : i32
    %317 = arith.cmpi eq, %arg1, %c0_i32_192 : i32
    %318 = arith.extui %317 : i1 to i32
    %c0_i32_193 = arith.constant 0 : i32
    %319 = arith.cmpi ne, %318, %c0_i32_193 : i32
    scf.if %319 {
      %c0_194 = arith.constant 0 : index
      %c0_195 = arith.constant 0 : index
      %c0_196 = arith.constant 0 : index
      %320 = vector.load %arg5[%c0_194, %c0_195, %c0_196] : memref<31x8x128xf32, #tpu.memory_space<vmem>>, vector<1x8x128xf32>
      %321 = vector.shape_cast %320 : vector<1x8x128xf32> to vector<8x128xf32>
      %322 = vector.shape_cast %321 : vector<8x128xf32> to vector<1x8x128xf32>
      %cst_197 = arith.constant dense<0.000000e+00> : vector<1xf32>
      %323 = vector.multi_reduction <add>, %322, %cst_197 [1, 2] : vector<1x8x128xf32> to vector<1xf32>
      %324 = vector.shape_cast %323 : vector<1xf32> to vector<1x1x1xf32>
      %325 = vector.extract %324[0, 0, 0] : f32 from vector<1x1x1xf32>
      %cst_198 = arith.constant 2.560000e+02 : f32
      %326 = arith.divf %325, %cst_198 : f32
      %327 = math.sqrt %326 : f32
      %c0_199 = arith.constant 0 : index
      %c0_200 = arith.constant 0 : index
      %328 = memref.load %arg4[%c0_199, %c0_200] : memref<31x1xf32, #tpu.memory_space<smem>>
      memref.store %327, %arg4[%c0_199, %c0_200] : memref<31x1xf32, #tpu.memory_space<smem>>
      %c1_201 = arith.constant 1 : index
      %c0_202 = arith.constant 0 : index
      %c0_203 = arith.constant 0 : index
      %329 = vector.load %arg5[%c1_201, %c0_202, %c0_203] : memref<31x8x128xf32, #tpu.memory_space<vmem>>, vector<1x8x128xf32>
      %330 = vector.shape_cast %329 : vector<1x8x128xf32> to vector<8x128xf32>
      %331 = vector.shape_cast %330 : vector<8x128xf32> to vector<1x8x128xf32>
      %cst_204 = arith.constant dense<0.000000e+00> : vector<1xf32>
      %332 = vector.multi_reduction <add>, %331, %cst_204 [1, 2] : vector<1x8x128xf32> to vector<1xf32>
      %333 = vector.shape_cast %332 : vector<1xf32> to vector<1x1x1xf32>
      %334 = vector.extract %333[0, 0, 0] : f32 from vector<1x1x1xf32>
      %cst_205 = arith.constant 2.560000e+02 : f32
      %335 = arith.divf %334, %cst_205 : f32
      %336 = math.sqrt %335 : f32
      %c1_206 = arith.constant 1 : index
      %c0_207 = arith.constant 0 : index
      %337 = memref.load %arg4[%c1_206, %c0_207] : memref<31x1xf32, #tpu.memory_space<smem>>
      memref.store %336, %arg4[%c1_206, %c0_207] : memref<31x1xf32, #tpu.memory_space<smem>>
      %c2_208 = arith.constant 2 : index
      %c0_209 = arith.constant 0 : index
      %c0_210 = arith.constant 0 : index
      %338 = vector.load %arg5[%c2_208, %c0_209, %c0_210] : memref<31x8x128xf32, #tpu.memory_space<vmem>>, vector<1x8x128xf32>
      %339 = vector.shape_cast %338 : vector<1x8x128xf32> to vector<8x128xf32>
      %340 = vector.shape_cast %339 : vector<8x128xf32> to vector<1x8x128xf32>
      %cst_211 = arith.constant dense<0.000000e+00> : vector<1xf32>
      %341 = vector.multi_reduction <add>, %340, %cst_211 [1, 2] : vector<1x8x128xf32> to vector<1xf32>
      %342 = vector.shape_cast %341 : vector<1xf32> to vector<1x1x1xf32>
      %343 = vector.extract %342[0, 0, 0] : f32 from vector<1x1x1xf32>
      %cst_212 = arith.constant 2.560000e+02 : f32
      %344 = arith.divf %343, %cst_212 : f32
      %345 = math.sqrt %344 : f32
      %c2_213 = arith.constant 2 : index
      %c0_214 = arith.constant 0 : index
      %346 = memref.load %arg4[%c2_213, %c0_214] : memref<31x1xf32, #tpu.memory_space<smem>>
      memref.store %345, %arg4[%c2_213, %c0_214] : memref<31x1xf32, #tpu.memory_space<smem>>
      %c3_215 = arith.constant 3 : index
      %c0_216 = arith.constant 0 : index
      %c0_217 = arith.constant 0 : index
      %347 = vector.load %arg5[%c3_215, %c0_216, %c0_217] : memref<31x8x128xf32, #tpu.memory_space<vmem>>, vector<1x8x128xf32>
      %348 = vector.shape_cast %347 : vector<1x8x128xf32> to vector<8x128xf32>
      %349 = vector.shape_cast %348 : vector<8x128xf32> to vector<1x8x128xf32>
      %cst_218 = arith.constant dense<0.000000e+00> : vector<1xf32>
      %350 = vector.multi_reduction <add>, %349, %cst_218 [1, 2] : vector<1x8x128xf32> to vector<1xf32>
      %351 = vector.shape_cast %350 : vector<1xf32> to vector<1x1x1xf32>
      %352 = vector.extract %351[0, 0, 0] : f32 from vector<1x1x1xf32>
      %cst_219 = arith.constant 2.560000e+02 : f32
      %353 = arith.divf %352, %cst_219 : f32
      %354 = math.sqrt %353 : f32
      %c3_220 = arith.constant 3 : index
      %c0_221 = arith.constant 0 : index
      %355 = memref.load %arg4[%c3_220, %c0_221] : memref<31x1xf32, #tpu.memory_space<smem>>
      memref.store %354, %arg4[%c3_220, %c0_221] : memref<31x1xf32, #tpu.memory_space<smem>>
      %c4_222 = arith.constant 4 : index
      %c0_223 = arith.constant 0 : index
      %c0_224 = arith.constant 0 : index
      %356 = vector.load %arg5[%c4_222, %c0_223, %c0_224] : memref<31x8x128xf32, #tpu.memory_space<vmem>>, vector<1x8x128xf32>
      %357 = vector.shape_cast %356 : vector<1x8x128xf32> to vector<8x128xf32>
      %358 = vector.shape_cast %357 : vector<8x128xf32> to vector<1x8x128xf32>
      %cst_225 = arith.constant dense<0.000000e+00> : vector<1xf32>
      %359 = vector.multi_reduction <add>, %358, %cst_225 [1, 2] : vector<1x8x128xf32> to vector<1xf32>
      %360 = vector.shape_cast %359 : vector<1xf32> to vector<1x1x1xf32>
      %361 = vector.extract %360[0, 0, 0] : f32 from vector<1x1x1xf32>
      %cst_226 = arith.constant 2.560000e+02 : f32
      %362 = arith.divf %361, %cst_226 : f32
      %363 = math.sqrt %362 : f32
      %c4_227 = arith.constant 4 : index
      %c0_228 = arith.constant 0 : index
      %364 = memref.load %arg4[%c4_227, %c0_228] : memref<31x1xf32, #tpu.memory_space<smem>>
      memref.store %363, %arg4[%c4_227, %c0_228] : memref<31x1xf32, #tpu.memory_space<smem>>
      %c5_229 = arith.constant 5 : index
      %c0_230 = arith.constant 0 : index
      %c0_231 = arith.constant 0 : index
      %365 = vector.load %arg5[%c5_229, %c0_230, %c0_231] : memref<31x8x128xf32, #tpu.memory_space<vmem>>, vector<1x8x128xf32>
      %366 = vector.shape_cast %365 : vector<1x8x128xf32> to vector<8x128xf32>
      %367 = vector.shape_cast %366 : vector<8x128xf32> to vector<1x8x128xf32>
      %cst_232 = arith.constant dense<0.000000e+00> : vector<1xf32>
      %368 = vector.multi_reduction <add>, %367, %cst_232 [1, 2] : vector<1x8x128xf32> to vector<1xf32>
      %369 = vector.shape_cast %368 : vector<1xf32> to vector<1x1x1xf32>
      %370 = vector.extract %369[0, 0, 0] : f32 from vector<1x1x1xf32>
      %cst_233 = arith.constant 2.560000e+02 : f32
      %371 = arith.divf %370, %cst_233 : f32
      %372 = math.sqrt %371 : f32
      %c5_234 = arith.constant 5 : index
      %c0_235 = arith.constant 0 : index
      %373 = memref.load %arg4[%c5_234, %c0_235] : memref<31x1xf32, #tpu.memory_space<smem>>
      memref.store %372, %arg4[%c5_234, %c0_235] : memref<31x1xf32, #tpu.memory_space<smem>>
      %c6_236 = arith.constant 6 : index
      %c0_237 = arith.constant 0 : index
      %c0_238 = arith.constant 0 : index
      %374 = vector.load %arg5[%c6_236, %c0_237, %c0_238] : memref<31x8x128xf32, #tpu.memory_space<vmem>>, vector<1x8x128xf32>
      %375 = vector.shape_cast %374 : vector<1x8x128xf32> to vector<8x128xf32>
      %376 = vector.shape_cast %375 : vector<8x128xf32> to vector<1x8x128xf32>
      %cst_239 = arith.constant dense<0.000000e+00> : vector<1xf32>
      %377 = vector.multi_reduction <add>, %376, %cst_239 [1, 2] : vector<1x8x128xf32> to vector<1xf32>
      %378 = vector.shape_cast %377 : vector<1xf32> to vector<1x1x1xf32>
      %379 = vector.extract %378[0, 0, 0] : f32 from vector<1x1x1xf32>
      %cst_240 = arith.constant 2.560000e+02 : f32
      %380 = arith.divf %379, %cst_240 : f32
      %381 = math.sqrt %380 : f32
      %c6_241 = arith.constant 6 : index
      %c0_242 = arith.constant 0 : index
      %382 = memref.load %arg4[%c6_241, %c0_242] : memref<31x1xf32, #tpu.memory_space<smem>>
      memref.store %381, %arg4[%c6_241, %c0_242] : memref<31x1xf32, #tpu.memory_space<smem>>
      %c7_243 = arith.constant 7 : index
      %c0_244 = arith.constant 0 : index
      %c0_245 = arith.constant 0 : index
      %383 = vector.load %arg5[%c7_243, %c0_244, %c0_245] : memref<31x8x128xf32, #tpu.memory_space<vmem>>, vector<1x8x128xf32>
      %384 = vector.shape_cast %383 : vector<1x8x128xf32> to vector<8x128xf32>
      %385 = vector.shape_cast %384 : vector<8x128xf32> to vector<1x8x128xf32>
      %cst_246 = arith.constant dense<0.000000e+00> : vector<1xf32>
      %386 = vector.multi_reduction <add>, %385, %cst_246 [1, 2] : vector<1x8x128xf32> to vector<1xf32>
      %387 = vector.shape_cast %386 : vector<1xf32> to vector<1x1x1xf32>
      %388 = vector.extract %387[0, 0, 0] : f32 from vector<1x1x1xf32>
      %cst_247 = arith.constant 2.560000e+02 : f32
      %389 = arith.divf %388, %cst_247 : f32
      %390 = math.sqrt %389 : f32
      %c7_248 = arith.constant 7 : index
      %c0_249 = arith.constant 0 : index
      %391 = memref.load %arg4[%c7_248, %c0_249] : memref<31x1xf32, #tpu.memory_space<smem>>
      memref.store %390, %arg4[%c7_248, %c0_249] : memref<31x1xf32, #tpu.memory_space<smem>>
      %c8_250 = arith.constant 8 : index
      %c0_251 = arith.constant 0 : index
      %c0_252 = arith.constant 0 : index
      %392 = vector.load %arg5[%c8_250, %c0_251, %c0_252] : memref<31x8x128xf32, #tpu.memory_space<vmem>>, vector<1x8x128xf32>
      %393 = vector.shape_cast %392 : vector<1x8x128xf32> to vector<8x128xf32>
      %394 = vector.shape_cast %393 : vector<8x128xf32> to vector<1x8x128xf32>
      %cst_253 = arith.constant dense<0.000000e+00> : vector<1xf32>
      %395 = vector.multi_reduction <add>, %394, %cst_253 [1, 2] : vector<1x8x128xf32> to vector<1xf32>
      %396 = vector.shape_cast %395 : vector<1xf32> to vector<1x1x1xf32>
      %397 = vector.extract %396[0, 0, 0] : f32 from vector<1x1x1xf32>
      %cst_254 = arith.constant 2.560000e+02 : f32
      %398 = arith.divf %397, %cst_254 : f32
      %399 = math.sqrt %398 : f32
      %c8_255 = arith.constant 8 : index
      %c0_256 = arith.constant 0 : index
      %400 = memref.load %arg4[%c8_255, %c0_256] : memref<31x1xf32, #tpu.memory_space<smem>>
      memref.store %399, %arg4[%c8_255, %c0_256] : memref<31x1xf32, #tpu.memory_space<smem>>
      %c9_257 = arith.constant 9 : index
      %c0_258 = arith.constant 0 : index
      %c0_259 = arith.constant 0 : index
      %401 = vector.load %arg5[%c9_257, %c0_258, %c0_259] : memref<31x8x128xf32, #tpu.memory_space<vmem>>, vector<1x8x128xf32>
      %402 = vector.shape_cast %401 : vector<1x8x128xf32> to vector<8x128xf32>
      %403 = vector.shape_cast %402 : vector<8x128xf32> to vector<1x8x128xf32>
      %cst_260 = arith.constant dense<0.000000e+00> : vector<1xf32>
      %404 = vector.multi_reduction <add>, %403, %cst_260 [1, 2] : vector<1x8x128xf32> to vector<1xf32>
      %405 = vector.shape_cast %404 : vector<1xf32> to vector<1x1x1xf32>
      %406 = vector.extract %405[0, 0, 0] : f32 from vector<1x1x1xf32>
      %cst_261 = arith.constant 2.560000e+02 : f32
      %407 = arith.divf %406, %cst_261 : f32
      %408 = math.sqrt %407 : f32
      %c9_262 = arith.constant 9 : index
      %c0_263 = arith.constant 0 : index
      %409 = memref.load %arg4[%c9_262, %c0_263] : memref<31x1xf32, #tpu.memory_space<smem>>
      memref.store %408, %arg4[%c9_262, %c0_263] : memref<31x1xf32, #tpu.memory_space<smem>>
      %c10_264 = arith.constant 10 : index
      %c0_265 = arith.constant 0 : index
      %c0_266 = arith.constant 0 : index
      %410 = vector.load %arg5[%c10_264, %c0_265, %c0_266] : memref<31x8x128xf32, #tpu.memory_space<vmem>>, vector<1x8x128xf32>
      %411 = vector.shape_cast %410 : vector<1x8x128xf32> to vector<8x128xf32>
      %412 = vector.shape_cast %411 : vector<8x128xf32> to vector<1x8x128xf32>
      %cst_267 = arith.constant dense<0.000000e+00> : vector<1xf32>
      %413 = vector.multi_reduction <add>, %412, %cst_267 [1, 2] : vector<1x8x128xf32> to vector<1xf32>
      %414 = vector.shape_cast %413 : vector<1xf32> to vector<1x1x1xf32>
      %415 = vector.extract %414[0, 0, 0] : f32 from vector<1x1x1xf32>
      %cst_268 = arith.constant 2.560000e+02 : f32
      %416 = arith.divf %415, %cst_268 : f32
      %417 = math.sqrt %416 : f32
      %c10_269 = arith.constant 10 : index
      %c0_270 = arith.constant 0 : index
      %418 = memref.load %arg4[%c10_269, %c0_270] : memref<31x1xf32, #tpu.memory_space<smem>>
      memref.store %417, %arg4[%c10_269, %c0_270] : memref<31x1xf32, #tpu.memory_space<smem>>
      %c11_271 = arith.constant 11 : index
      %c0_272 = arith.constant 0 : index
      %c0_273 = arith.constant 0 : index
      %419 = vector.load %arg5[%c11_271, %c0_272, %c0_273] : memref<31x8x128xf32, #tpu.memory_space<vmem>>, vector<1x8x128xf32>
      %420 = vector.shape_cast %419 : vector<1x8x128xf32> to vector<8x128xf32>
      %421 = vector.shape_cast %420 : vector<8x128xf32> to vector<1x8x128xf32>
      %cst_274 = arith.constant dense<0.000000e+00> : vector<1xf32>
      %422 = vector.multi_reduction <add>, %421, %cst_274 [1, 2] : vector<1x8x128xf32> to vector<1xf32>
      %423 = vector.shape_cast %422 : vector<1xf32> to vector<1x1x1xf32>
      %424 = vector.extract %423[0, 0, 0] : f32 from vector<1x1x1xf32>
      %cst_275 = arith.constant 2.560000e+02 : f32
      %425 = arith.divf %424, %cst_275 : f32
      %426 = math.sqrt %425 : f32
      %c11_276 = arith.constant 11 : index
      %c0_277 = arith.constant 0 : index
      %427 = memref.load %arg4[%c11_276, %c0_277] : memref<31x1xf32, #tpu.memory_space<smem>>
      memref.store %426, %arg4[%c11_276, %c0_277] : memref<31x1xf32, #tpu.memory_space<smem>>
      %c12_278 = arith.constant 12 : index
      %c0_279 = arith.constant 0 : index
      %c0_280 = arith.constant 0 : index
      %428 = vector.load %arg5[%c12_278, %c0_279, %c0_280] : memref<31x8x128xf32, #tpu.memory_space<vmem>>, vector<1x8x128xf32>
      %429 = vector.shape_cast %428 : vector<1x8x128xf32> to vector<8x128xf32>
      %430 = vector.shape_cast %429 : vector<8x128xf32> to vector<1x8x128xf32>
      %cst_281 = arith.constant dense<0.000000e+00> : vector<1xf32>
      %431 = vector.multi_reduction <add>, %430, %cst_281 [1, 2] : vector<1x8x128xf32> to vector<1xf32>
      %432 = vector.shape_cast %431 : vector<1xf32> to vector<1x1x1xf32>
      %433 = vector.extract %432[0, 0, 0] : f32 from vector<1x1x1xf32>
      %cst_282 = arith.constant 2.560000e+02 : f32
      %434 = arith.divf %433, %cst_282 : f32
      %435 = math.sqrt %434 : f32
      %c12_283 = arith.constant 12 : index
      %c0_284 = arith.constant 0 : index
      %436 = memref.load %arg4[%c12_283, %c0_284] : memref<31x1xf32, #tpu.memory_space<smem>>
      memref.store %435, %arg4[%c12_283, %c0_284] : memref<31x1xf32, #tpu.memory_space<smem>>
      %c13_285 = arith.constant 13 : index
      %c0_286 = arith.constant 0 : index
      %c0_287 = arith.constant 0 : index
      %437 = vector.load %arg5[%c13_285, %c0_286, %c0_287] : memref<31x8x128xf32, #tpu.memory_space<vmem>>, vector<1x8x128xf32>
      %438 = vector.shape_cast %437 : vector<1x8x128xf32> to vector<8x128xf32>
      %439 = vector.shape_cast %438 : vector<8x128xf32> to vector<1x8x128xf32>
      %cst_288 = arith.constant dense<0.000000e+00> : vector<1xf32>
      %440 = vector.multi_reduction <add>, %439, %cst_288 [1, 2] : vector<1x8x128xf32> to vector<1xf32>
      %441 = vector.shape_cast %440 : vector<1xf32> to vector<1x1x1xf32>
      %442 = vector.extract %441[0, 0, 0] : f32 from vector<1x1x1xf32>
      %cst_289 = arith.constant 2.560000e+02 : f32
      %443 = arith.divf %442, %cst_289 : f32
      %444 = math.sqrt %443 : f32
      %c13_290 = arith.constant 13 : index
      %c0_291 = arith.constant 0 : index
      %445 = memref.load %arg4[%c13_290, %c0_291] : memref<31x1xf32, #tpu.memory_space<smem>>
      memref.store %444, %arg4[%c13_290, %c0_291] : memref<31x1xf32, #tpu.memory_space<smem>>
      %c14_292 = arith.constant 14 : index
      %c0_293 = arith.constant 0 : index
      %c0_294 = arith.constant 0 : index
      %446 = vector.load %arg5[%c14_292, %c0_293, %c0_294] : memref<31x8x128xf32, #tpu.memory_space<vmem>>, vector<1x8x128xf32>
      %447 = vector.shape_cast %446 : vector<1x8x128xf32> to vector<8x128xf32>
      %448 = vector.shape_cast %447 : vector<8x128xf32> to vector<1x8x128xf32>
      %cst_295 = arith.constant dense<0.000000e+00> : vector<1xf32>
      %449 = vector.multi_reduction <add>, %448, %cst_295 [1, 2] : vector<1x8x128xf32> to vector<1xf32>
      %450 = vector.shape_cast %449 : vector<1xf32> to vector<1x1x1xf32>
      %451 = vector.extract %450[0, 0, 0] : f32 from vector<1x1x1xf32>
      %cst_296 = arith.constant 2.560000e+02 : f32
      %452 = arith.divf %451, %cst_296 : f32
      %453 = math.sqrt %452 : f32
      %c14_297 = arith.constant 14 : index
      %c0_298 = arith.constant 0 : index
      %454 = memref.load %arg4[%c14_297, %c0_298] : memref<31x1xf32, #tpu.memory_space<smem>>
      memref.store %453, %arg4[%c14_297, %c0_298] : memref<31x1xf32, #tpu.memory_space<smem>>
      %c15_299 = arith.constant 15 : index
      %c0_300 = arith.constant 0 : index
      %c0_301 = arith.constant 0 : index
      %455 = vector.load %arg5[%c15_299, %c0_300, %c0_301] : memref<31x8x128xf32, #tpu.memory_space<vmem>>, vector<1x8x128xf32>
      %456 = vector.shape_cast %455 : vector<1x8x128xf32> to vector<8x128xf32>
      %457 = vector.shape_cast %456 : vector<8x128xf32> to vector<1x8x128xf32>
      %cst_302 = arith.constant dense<0.000000e+00> : vector<1xf32>
      %458 = vector.multi_reduction <add>, %457, %cst_302 [1, 2] : vector<1x8x128xf32> to vector<1xf32>
      %459 = vector.shape_cast %458 : vector<1xf32> to vector<1x1x1xf32>
      %460 = vector.extract %459[0, 0, 0] : f32 from vector<1x1x1xf32>
      %cst_303 = arith.constant 2.560000e+02 : f32
      %461 = arith.divf %460, %cst_303 : f32
      %462 = math.sqrt %461 : f32
      %c15_304 = arith.constant 15 : index
      %c0_305 = arith.constant 0 : index
      %463 = memref.load %arg4[%c15_304, %c0_305] : memref<31x1xf32, #tpu.memory_space<smem>>
      memref.store %462, %arg4[%c15_304, %c0_305] : memref<31x1xf32, #tpu.memory_space<smem>>
      %c16_306 = arith.constant 16 : index
      %c0_307 = arith.constant 0 : index
      %c0_308 = arith.constant 0 : index
      %464 = vector.load %arg5[%c16_306, %c0_307, %c0_308] : memref<31x8x128xf32, #tpu.memory_space<vmem>>, vector<1x8x128xf32>
      %465 = vector.shape_cast %464 : vector<1x8x128xf32> to vector<8x128xf32>
      %466 = vector.shape_cast %465 : vector<8x128xf32> to vector<1x8x128xf32>
      %cst_309 = arith.constant dense<0.000000e+00> : vector<1xf32>
      %467 = vector.multi_reduction <add>, %466, %cst_309 [1, 2] : vector<1x8x128xf32> to vector<1xf32>
      %468 = vector.shape_cast %467 : vector<1xf32> to vector<1x1x1xf32>
      %469 = vector.extract %468[0, 0, 0] : f32 from vector<1x1x1xf32>
      %cst_310 = arith.constant 2.560000e+02 : f32
      %470 = arith.divf %469, %cst_310 : f32
      %471 = math.sqrt %470 : f32
      %c16_311 = arith.constant 16 : index
      %c0_312 = arith.constant 0 : index
      %472 = memref.load %arg4[%c16_311, %c0_312] : memref<31x1xf32, #tpu.memory_space<smem>>
      memref.store %471, %arg4[%c16_311, %c0_312] : memref<31x1xf32, #tpu.memory_space<smem>>
      %c17_313 = arith.constant 17 : index
      %c0_314 = arith.constant 0 : index
      %c0_315 = arith.constant 0 : index
      %473 = vector.load %arg5[%c17_313, %c0_314, %c0_315] : memref<31x8x128xf32, #tpu.memory_space<vmem>>, vector<1x8x128xf32>
      %474 = vector.shape_cast %473 : vector<1x8x128xf32> to vector<8x128xf32>
      %475 = vector.shape_cast %474 : vector<8x128xf32> to vector<1x8x128xf32>
      %cst_316 = arith.constant dense<0.000000e+00> : vector<1xf32>
      %476 = vector.multi_reduction <add>, %475, %cst_316 [1, 2] : vector<1x8x128xf32> to vector<1xf32>
      %477 = vector.shape_cast %476 : vector<1xf32> to vector<1x1x1xf32>
      %478 = vector.extract %477[0, 0, 0] : f32 from vector<1x1x1xf32>
      %cst_317 = arith.constant 2.560000e+02 : f32
      %479 = arith.divf %478, %cst_317 : f32
      %480 = math.sqrt %479 : f32
      %c17_318 = arith.constant 17 : index
      %c0_319 = arith.constant 0 : index
      %481 = memref.load %arg4[%c17_318, %c0_319] : memref<31x1xf32, #tpu.memory_space<smem>>
      memref.store %480, %arg4[%c17_318, %c0_319] : memref<31x1xf32, #tpu.memory_space<smem>>
      %c18_320 = arith.constant 18 : index
      %c0_321 = arith.constant 0 : index
      %c0_322 = arith.constant 0 : index
      %482 = vector.load %arg5[%c18_320, %c0_321, %c0_322] : memref<31x8x128xf32, #tpu.memory_space<vmem>>, vector<1x8x128xf32>
      %483 = vector.shape_cast %482 : vector<1x8x128xf32> to vector<8x128xf32>
      %484 = vector.shape_cast %483 : vector<8x128xf32> to vector<1x8x128xf32>
      %cst_323 = arith.constant dense<0.000000e+00> : vector<1xf32>
      %485 = vector.multi_reduction <add>, %484, %cst_323 [1, 2] : vector<1x8x128xf32> to vector<1xf32>
      %486 = vector.shape_cast %485 : vector<1xf32> to vector<1x1x1xf32>
      %487 = vector.extract %486[0, 0, 0] : f32 from vector<1x1x1xf32>
      %cst_324 = arith.constant 2.560000e+02 : f32
      %488 = arith.divf %487, %cst_324 : f32
      %489 = math.sqrt %488 : f32
      %c18_325 = arith.constant 18 : index
      %c0_326 = arith.constant 0 : index
      %490 = memref.load %arg4[%c18_325, %c0_326] : memref<31x1xf32, #tpu.memory_space<smem>>
      memref.store %489, %arg4[%c18_325, %c0_326] : memref<31x1xf32, #tpu.memory_space<smem>>
      %c19_327 = arith.constant 19 : index
      %c0_328 = arith.constant 0 : index
      %c0_329 = arith.constant 0 : index
      %491 = vector.load %arg5[%c19_327, %c0_328, %c0_329] : memref<31x8x128xf32, #tpu.memory_space<vmem>>, vector<1x8x128xf32>
      %492 = vector.shape_cast %491 : vector<1x8x128xf32> to vector<8x128xf32>
      %493 = vector.shape_cast %492 : vector<8x128xf32> to vector<1x8x128xf32>
      %cst_330 = arith.constant dense<0.000000e+00> : vector<1xf32>
      %494 = vector.multi_reduction <add>, %493, %cst_330 [1, 2] : vector<1x8x128xf32> to vector<1xf32>
      %495 = vector.shape_cast %494 : vector<1xf32> to vector<1x1x1xf32>
      %496 = vector.extract %495[0, 0, 0] : f32 from vector<1x1x1xf32>
      %cst_331 = arith.constant 2.560000e+02 : f32
      %497 = arith.divf %496, %cst_331 : f32
      %498 = math.sqrt %497 : f32
      %c19_332 = arith.constant 19 : index
      %c0_333 = arith.constant 0 : index
      %499 = memref.load %arg4[%c19_332, %c0_333] : memref<31x1xf32, #tpu.memory_space<smem>>
      memref.store %498, %arg4[%c19_332, %c0_333] : memref<31x1xf32, #tpu.memory_space<smem>>
      %c20_334 = arith.constant 20 : index
      %c0_335 = arith.constant 0 : index
      %c0_336 = arith.constant 0 : index
      %500 = vector.load %arg5[%c20_334, %c0_335, %c0_336] : memref<31x8x128xf32, #tpu.memory_space<vmem>>, vector<1x8x128xf32>
      %501 = vector.shape_cast %500 : vector<1x8x128xf32> to vector<8x128xf32>
      %502 = vector.shape_cast %501 : vector<8x128xf32> to vector<1x8x128xf32>
      %cst_337 = arith.constant dense<0.000000e+00> : vector<1xf32>
      %503 = vector.multi_reduction <add>, %502, %cst_337 [1, 2] : vector<1x8x128xf32> to vector<1xf32>
      %504 = vector.shape_cast %503 : vector<1xf32> to vector<1x1x1xf32>
      %505 = vector.extract %504[0, 0, 0] : f32 from vector<1x1x1xf32>
      %cst_338 = arith.constant 2.560000e+02 : f32
      %506 = arith.divf %505, %cst_338 : f32
      %507 = math.sqrt %506 : f32
      %c20_339 = arith.constant 20 : index
      %c0_340 = arith.constant 0 : index
      %508 = memref.load %arg4[%c20_339, %c0_340] : memref<31x1xf32, #tpu.memory_space<smem>>
      memref.store %507, %arg4[%c20_339, %c0_340] : memref<31x1xf32, #tpu.memory_space<smem>>
      %c21_341 = arith.constant 21 : index
      %c0_342 = arith.constant 0 : index
      %c0_343 = arith.constant 0 : index
      %509 = vector.load %arg5[%c21_341, %c0_342, %c0_343] : memref<31x8x128xf32, #tpu.memory_space<vmem>>, vector<1x8x128xf32>
      %510 = vector.shape_cast %509 : vector<1x8x128xf32> to vector<8x128xf32>
      %511 = vector.shape_cast %510 : vector<8x128xf32> to vector<1x8x128xf32>
      %cst_344 = arith.constant dense<0.000000e+00> : vector<1xf32>
      %512 = vector.multi_reduction <add>, %511, %cst_344 [1, 2] : vector<1x8x128xf32> to vector<1xf32>
      %513 = vector.shape_cast %512 : vector<1xf32> to vector<1x1x1xf32>
      %514 = vector.extract %513[0, 0, 0] : f32 from vector<1x1x1xf32>
      %cst_345 = arith.constant 2.560000e+02 : f32
      %515 = arith.divf %514, %cst_345 : f32
      %516 = math.sqrt %515 : f32
      %c21_346 = arith.constant 21 : index
      %c0_347 = arith.constant 0 : index
      %517 = memref.load %arg4[%c21_346, %c0_347] : memref<31x1xf32, #tpu.memory_space<smem>>
      memref.store %516, %arg4[%c21_346, %c0_347] : memref<31x1xf32, #tpu.memory_space<smem>>
      %c22_348 = arith.constant 22 : index
      %c0_349 = arith.constant 0 : index
      %c0_350 = arith.constant 0 : index
      %518 = vector.load %arg5[%c22_348, %c0_349, %c0_350] : memref<31x8x128xf32, #tpu.memory_space<vmem>>, vector<1x8x128xf32>
      %519 = vector.shape_cast %518 : vector<1x8x128xf32> to vector<8x128xf32>
      %520 = vector.shape_cast %519 : vector<8x128xf32> to vector<1x8x128xf32>
      %cst_351 = arith.constant dense<0.000000e+00> : vector<1xf32>
      %521 = vector.multi_reduction <add>, %520, %cst_351 [1, 2] : vector<1x8x128xf32> to vector<1xf32>
      %522 = vector.shape_cast %521 : vector<1xf32> to vector<1x1x1xf32>
      %523 = vector.extract %522[0, 0, 0] : f32 from vector<1x1x1xf32>
      %cst_352 = arith.constant 2.560000e+02 : f32
      %524 = arith.divf %523, %cst_352 : f32
      %525 = math.sqrt %524 : f32
      %c22_353 = arith.constant 22 : index
      %c0_354 = arith.constant 0 : index
      %526 = memref.load %arg4[%c22_353, %c0_354] : memref<31x1xf32, #tpu.memory_space<smem>>
      memref.store %525, %arg4[%c22_353, %c0_354] : memref<31x1xf32, #tpu.memory_space<smem>>
      %c23_355 = arith.constant 23 : index
      %c0_356 = arith.constant 0 : index
      %c0_357 = arith.constant 0 : index
      %527 = vector.load %arg5[%c23_355, %c0_356, %c0_357] : memref<31x8x128xf32, #tpu.memory_space<vmem>>, vector<1x8x128xf32>
      %528 = vector.shape_cast %527 : vector<1x8x128xf32> to vector<8x128xf32>
      %529 = vector.shape_cast %528 : vector<8x128xf32> to vector<1x8x128xf32>
      %cst_358 = arith.constant dense<0.000000e+00> : vector<1xf32>
      %530 = vector.multi_reduction <add>, %529, %cst_358 [1, 2] : vector<1x8x128xf32> to vector<1xf32>
      %531 = vector.shape_cast %530 : vector<1xf32> to vector<1x1x1xf32>
      %532 = vector.extract %531[0, 0, 0] : f32 from vector<1x1x1xf32>
      %cst_359 = arith.constant 2.560000e+02 : f32
      %533 = arith.divf %532, %cst_359 : f32
      %534 = math.sqrt %533 : f32
      %c23_360 = arith.constant 23 : index
      %c0_361 = arith.constant 0 : index
      %535 = memref.load %arg4[%c23_360, %c0_361] : memref<31x1xf32, #tpu.memory_space<smem>>
      memref.store %534, %arg4[%c23_360, %c0_361] : memref<31x1xf32, #tpu.memory_space<smem>>
      %c24_362 = arith.constant 24 : index
      %c0_363 = arith.constant 0 : index
      %c0_364 = arith.constant 0 : index
      %536 = vector.load %arg5[%c24_362, %c0_363, %c0_364] : memref<31x8x128xf32, #tpu.memory_space<vmem>>, vector<1x8x128xf32>
      %537 = vector.shape_cast %536 : vector<1x8x128xf32> to vector<8x128xf32>
      %538 = vector.shape_cast %537 : vector<8x128xf32> to vector<1x8x128xf32>
      %cst_365 = arith.constant dense<0.000000e+00> : vector<1xf32>
      %539 = vector.multi_reduction <add>, %538, %cst_365 [1, 2] : vector<1x8x128xf32> to vector<1xf32>
      %540 = vector.shape_cast %539 : vector<1xf32> to vector<1x1x1xf32>
      %541 = vector.extract %540[0, 0, 0] : f32 from vector<1x1x1xf32>
      %cst_366 = arith.constant 2.560000e+02 : f32
      %542 = arith.divf %541, %cst_366 : f32
      %543 = math.sqrt %542 : f32
      %c24_367 = arith.constant 24 : index
      %c0_368 = arith.constant 0 : index
      %544 = memref.load %arg4[%c24_367, %c0_368] : memref<31x1xf32, #tpu.memory_space<smem>>
      memref.store %543, %arg4[%c24_367, %c0_368] : memref<31x1xf32, #tpu.memory_space<smem>>
      %c25_369 = arith.constant 25 : index
      %c0_370 = arith.constant 0 : index
      %c0_371 = arith.constant 0 : index
      %545 = vector.load %arg5[%c25_369, %c0_370, %c0_371] : memref<31x8x128xf32, #tpu.memory_space<vmem>>, vector<1x8x128xf32>
      %546 = vector.shape_cast %545 : vector<1x8x128xf32> to vector<8x128xf32>
      %547 = vector.shape_cast %546 : vector<8x128xf32> to vector<1x8x128xf32>
      %cst_372 = arith.constant dense<0.000000e+00> : vector<1xf32>
      %548 = vector.multi_reduction <add>, %547, %cst_372 [1, 2] : vector<1x8x128xf32> to vector<1xf32>
      %549 = vector.shape_cast %548 : vector<1xf32> to vector<1x1x1xf32>
      %550 = vector.extract %549[0, 0, 0] : f32 from vector<1x1x1xf32>
      %cst_373 = arith.constant 2.560000e+02 : f32
      %551 = arith.divf %550, %cst_373 : f32
      %552 = math.sqrt %551 : f32
      %c25_374 = arith.constant 25 : index
      %c0_375 = arith.constant 0 : index
      %553 = memref.load %arg4[%c25_374, %c0_375] : memref<31x1xf32, #tpu.memory_space<smem>>
      memref.store %552, %arg4[%c25_374, %c0_375] : memref<31x1xf32, #tpu.memory_space<smem>>
      %c26_376 = arith.constant 26 : index
      %c0_377 = arith.constant 0 : index
      %c0_378 = arith.constant 0 : index
      %554 = vector.load %arg5[%c26_376, %c0_377, %c0_378] : memref<31x8x128xf32, #tpu.memory_space<vmem>>, vector<1x8x128xf32>
      %555 = vector.shape_cast %554 : vector<1x8x128xf32> to vector<8x128xf32>
      %556 = vector.shape_cast %555 : vector<8x128xf32> to vector<1x8x128xf32>
      %cst_379 = arith.constant dense<0.000000e+00> : vector<1xf32>
      %557 = vector.multi_reduction <add>, %556, %cst_379 [1, 2] : vector<1x8x128xf32> to vector<1xf32>
      %558 = vector.shape_cast %557 : vector<1xf32> to vector<1x1x1xf32>
      %559 = vector.extract %558[0, 0, 0] : f32 from vector<1x1x1xf32>
      %cst_380 = arith.constant 2.560000e+02 : f32
      %560 = arith.divf %559, %cst_380 : f32
      %561 = math.sqrt %560 : f32
      %c26_381 = arith.constant 26 : index
      %c0_382 = arith.constant 0 : index
      %562 = memref.load %arg4[%c26_381, %c0_382] : memref<31x1xf32, #tpu.memory_space<smem>>
      memref.store %561, %arg4[%c26_381, %c0_382] : memref<31x1xf32, #tpu.memory_space<smem>>
      %c27_383 = arith.constant 27 : index
      %c0_384 = arith.constant 0 : index
      %c0_385 = arith.constant 0 : index
      %563 = vector.load %arg5[%c27_383, %c0_384, %c0_385] : memref<31x8x128xf32, #tpu.memory_space<vmem>>, vector<1x8x128xf32>
      %564 = vector.shape_cast %563 : vector<1x8x128xf32> to vector<8x128xf32>
      %565 = vector.shape_cast %564 : vector<8x128xf32> to vector<1x8x128xf32>
      %cst_386 = arith.constant dense<0.000000e+00> : vector<1xf32>
      %566 = vector.multi_reduction <add>, %565, %cst_386 [1, 2] : vector<1x8x128xf32> to vector<1xf32>
      %567 = vector.shape_cast %566 : vector<1xf32> to vector<1x1x1xf32>
      %568 = vector.extract %567[0, 0, 0] : f32 from vector<1x1x1xf32>
      %cst_387 = arith.constant 2.560000e+02 : f32
      %569 = arith.divf %568, %cst_387 : f32
      %570 = math.sqrt %569 : f32
      %c27_388 = arith.constant 27 : index
      %c0_389 = arith.constant 0 : index
      %571 = memref.load %arg4[%c27_388, %c0_389] : memref<31x1xf32, #tpu.memory_space<smem>>
      memref.store %570, %arg4[%c27_388, %c0_389] : memref<31x1xf32, #tpu.memory_space<smem>>
      %c28_390 = arith.constant 28 : index
      %c0_391 = arith.constant 0 : index
      %c0_392 = arith.constant 0 : index
      %572 = vector.load %arg5[%c28_390, %c0_391, %c0_392] : memref<31x8x128xf32, #tpu.memory_space<vmem>>, vector<1x8x128xf32>
      %573 = vector.shape_cast %572 : vector<1x8x128xf32> to vector<8x128xf32>
      %574 = vector.shape_cast %573 : vector<8x128xf32> to vector<1x8x128xf32>
      %cst_393 = arith.constant dense<0.000000e+00> : vector<1xf32>
      %575 = vector.multi_reduction <add>, %574, %cst_393 [1, 2] : vector<1x8x128xf32> to vector<1xf32>
      %576 = vector.shape_cast %575 : vector<1xf32> to vector<1x1x1xf32>
      %577 = vector.extract %576[0, 0, 0] : f32 from vector<1x1x1xf32>
      %cst_394 = arith.constant 2.560000e+02 : f32
      %578 = arith.divf %577, %cst_394 : f32
      %579 = math.sqrt %578 : f32
      %c28_395 = arith.constant 28 : index
      %c0_396 = arith.constant 0 : index
      %580 = memref.load %arg4[%c28_395, %c0_396] : memref<31x1xf32, #tpu.memory_space<smem>>
      memref.store %579, %arg4[%c28_395, %c0_396] : memref<31x1xf32, #tpu.memory_space<smem>>
      %c29_397 = arith.constant 29 : index
      %c0_398 = arith.constant 0 : index
      %c0_399 = arith.constant 0 : index
      %581 = vector.load %arg5[%c29_397, %c0_398, %c0_399] : memref<31x8x128xf32, #tpu.memory_space<vmem>>, vector<1x8x128xf32>
      %582 = vector.shape_cast %581 : vector<1x8x128xf32> to vector<8x128xf32>
      %583 = vector.shape_cast %582 : vector<8x128xf32> to vector<1x8x128xf32>
      %cst_400 = arith.constant dense<0.000000e+00> : vector<1xf32>
      %584 = vector.multi_reduction <add>, %583, %cst_400 [1, 2] : vector<1x8x128xf32> to vector<1xf32>
      %585 = vector.shape_cast %584 : vector<1xf32> to vector<1x1x1xf32>
      %586 = vector.extract %585[0, 0, 0] : f32 from vector<1x1x1xf32>
      %cst_401 = arith.constant 2.560000e+02 : f32
      %587 = arith.divf %586, %cst_401 : f32
      %588 = math.sqrt %587 : f32
      %c29_402 = arith.constant 29 : index
      %c0_403 = arith.constant 0 : index
      %589 = memref.load %arg4[%c29_402, %c0_403] : memref<31x1xf32, #tpu.memory_space<smem>>
      memref.store %588, %arg4[%c29_402, %c0_403] : memref<31x1xf32, #tpu.memory_space<smem>>
      %c30_404 = arith.constant 30 : index
      %c0_405 = arith.constant 0 : index
      %c0_406 = arith.constant 0 : index
      %590 = vector.load %arg5[%c30_404, %c0_405, %c0_406] : memref<31x8x128xf32, #tpu.memory_space<vmem>>, vector<1x8x128xf32>
      %591 = vector.shape_cast %590 : vector<1x8x128xf32> to vector<8x128xf32>
      %592 = vector.shape_cast %591 : vector<8x128xf32> to vector<1x8x128xf32>
      %cst_407 = arith.constant dense<0.000000e+00> : vector<1xf32>
      %593 = vector.multi_reduction <add>, %592, %cst_407 [1, 2] : vector<1x8x128xf32> to vector<1xf32>
      %594 = vector.shape_cast %593 : vector<1xf32> to vector<1x1x1xf32>
      %595 = vector.extract %594[0, 0, 0] : f32 from vector<1x1x1xf32>
      %cst_408 = arith.constant 2.560000e+02 : f32
      %596 = arith.divf %595, %cst_408 : f32
      %597 = math.sqrt %596 : f32
      %c30_409 = arith.constant 30 : index
      %c0_410 = arith.constant 0 : index
      %598 = memref.load %arg4[%c30_409, %c0_410] : memref<31x1xf32, #tpu.memory_space<smem>>
      memref.store %597, %arg4[%c30_409, %c0_410] : memref<31x1xf32, #tpu.memory_space<smem>>
    } else {
    }
    return
  }
  func.func @transform_0(%arg0: i32, %arg1: i32) -> (i32, i32, i32) {
    %c0_i32 = arith.constant 0 : i32
    %c0_i32_0 = arith.constant 0 : i32
    return %arg0, %arg1, %c0_i32 : i32, i32, i32
  }
  func.func @transform_1(%arg0: i32, %arg1: i32) -> (i32, i32, i32) {
    %c0_i32 = arith.constant 0 : i32
    %c0_i32_0 = arith.constant 0 : i32
    return %arg0, %arg1, %c0_i32 : i32, i32, i32
  }
  func.func @transform_2(%arg0: i32, %arg1: i32) -> (i32, i32) {
    %c0_i32 = arith.constant 0 : i32
    %c0_i32_0 = arith.constant 0 : i32
    return %arg0, %c0_i32 : i32, i32
  }
}

</mosaic_0001>

<bundles_post_ra>
// kernel: tpu_custom_call.1
= control target key start
LH: loop header
LB: loop body
LE: loop exit
PB: predicated region body
PF: predicated region fallthrough
CT: control target
= control target key end

     0   :  { %7 = vsyncpa [#allocation4], 0  ;;  %s1428_s0 = inlined_call_operand.hbm [shape: f32[31,8,128], index: 0, kind: input, shape index: {}]   ;;  %s1429_s1 = inlined_call_operand.hbm [shape: f32[31,8,128], index: 1, kind: input, shape index: {}]   ;;  %s1430_s2 = inlined_call_operand.vmem [shape: f32[31,1], index: 2, kind: output, shape index: {}]  }
   0x1   :  { %8 = vsyncpa [#allocation7], 0 }
   0x2   :  { %9 = vsyncpa [#allocation5], 0  ;;  %s1372_s9 = smov [#allocation3]   ;;  %s1310_s13 = scalar_lea.hbm %s1428_s0, 3968 }
   0x3   :  { %s15_s10 = sshll.u32 %s1372_s9, 4  ;;  %p1311_p0 = scmp.ne.s32.totalorder %s1428_s0, %s1310_s13  ;;  %s16_s10 = int_to_ptr.vmem [resolvable:$true] %s15_s10 }
   0x4   :  { %p1314_p1 = scmp.lt.u32.totalorder %s1310_s13, %s1428_s0 }
   0x6   :  { %p1316_p2 = pnand %p1314_p1, %p1311_p0 }
   0x8   :  { %1319 = shalt.err (!%p1316_p2)
}
   0x9   :  { %s1320_s18 = scalar_lea.vmem %s16_s10, 3968  ;;  %p1325_p4 = scmp.lt.s32.totalorder %s16_s10, %s16_s10 }
   0xa   :  { %p1321_p3 = scmp.ne.s32.totalorder %s16_s10, %s1320_s18  ;;  %p1326_p5 = scmp.lt.s32.totalorder %s1320_s18, %s1320_s18 }
   0xc   :  { %p1327_p6 = por %p1326_p5, %p1325_p4 }
   0xe   :  { %p1328_p7 = pnand %p1327_p6, %p1321_p3 }
  0x10   :  { %1331 = shalt.err (!%p1328_p7)
}
  0x11   :  { %s1373_s19 = smov 128   ;;  %s1374_s20 = smov 8  }
  0x12   :  { %21 = dma.hbm_to_vmem [thread:$0]  %s1428_s0, 3968, %s16_s10, [#allocation4], %s1373_s19, %s1373_s19, %s1374_s20  }
  0x13   :  { %s1375_s23 = smov [#allocation6]   ;;  %s1332_s27 = scalar_lea.hbm %s1429_s1, 3968 }
  0x14   :  { %s27_s24 = sshll.u32 %s1375_s23, 4  ;;  %p1333_p8 = scmp.ne.s32.totalorder %s1429_s1, %s1332_s27  ;;  %s28_s24 = int_to_ptr.vmem [resolvable:$true] %s27_s24 }
  0x15   :  { %p1336_p9 = scmp.lt.u32.totalorder %s1332_s27, %s1429_s1 }
  0x17   :  { %p1338_p10 = pnand %p1336_p9, %p1333_p8 }
  0x19   :  { %1341 = shalt.err (!%p1338_p10)
}
  0x1a   :  { %s1342_s4 = scalar_lea.vmem %s28_s24, 3968  ;;  %p1347_p12 = scmp.lt.s32.totalorder %s28_s24, %s28_s24 }
  0x1b   :  { %p1343_p11 = scmp.ne.s32.totalorder %s28_s24, %s1342_s4  ;;  %p1348_p13 = scmp.lt.s32.totalorder %s1342_s4, %s1342_s4 }
  0x1d   :  { %p1349_p0 = por %p1348_p13, %p1347_p12 }
  0x1f   :  { %p1350_p1 = pnand %p1349_p0, %p1343_p11 }
  0x21   :  { %1353 = shalt.err (!%p1350_p1)
}
  0x22   :  { %33 = dma.hbm_to_vmem [thread:$0]  %s1429_s1, 3968, %s28_s24, [#allocation7], %s1373_s19, %s1373_s19, %s1374_s20  }
  0x23   :  { %1366 = dma.done.wait [#allocation4], 3968  }
  0x24   :  { %1367 = vsyncadd [#allocation4], 4294963328 }
  0x25   :  { %1368 = dma.done.wait [#allocation7], 3968  }
  0x26   :  { %1369 = vsyncadd [#allocation7], 4294963328  ;;  %v75_v0 = vld [vmem:[#allocation3] sm:$0xff]  ;;  %v106_v1 = vld [vmem:[#allocation6] sm:$0xff] }
  0x27   :  { %v76_v2 = vld [vmem:[#allocation3 + $0x8] sm:$0xff]  ;;  %v137_v3 = vsub.f32 %v75_v0, %v106_v1  ;;  %v107_v4 = vld [vmem:[#allocation6 + $0x8] sm:$0xff]  ;;  %v77_v5 = vld [vmem:[#allocation3 + $0x10] sm:$0xff] }
  0x28   :  { %v108_v6 = vld [vmem:[#allocation6 + $0x10] sm:$0xff]  ;;  %v138_v7 = vsub.f32 %v76_v2, %v107_v4  ;;  %v78_v12 = vld [vmem:[#allocation3 + $0x18] sm:$0xff]  ;;  %v109_v13 = vld [vmem:[#allocation6 + $0x18] sm:$0xff] }
  0x29   :  { %v139_v8 = vsub.f32 %v77_v5, %v108_v6  ;;  %v168_v9 = vmul.f32 %v137_v3, %v137_v3  ;;  %v140_v14 = vsub.f32 %v78_v12, %v109_v13  ;;  %v79_v16 = vld [vmem:[#allocation3 + $0x20] sm:$0xff]  ;;  %v110_v17 = vld [vmem:[#allocation6 + $0x20] sm:$0xff]  ;;  %v80_v27 = vld [vmem:[#allocation3 + $0x28] sm:$0xff] }
  0x2a   :  { %v169_v11 = vmul.f32 %v138_v7, %v138_v7  ;;  %v141_v18 = vsub.f32 %v79_v16, %v110_v17  ;;  %v111_v28 = vld [vmem:[#allocation6 + $0x28] sm:$0xff]  ;;  %v81_v44 = vld [vmem:[#allocation3 + $0x30] sm:$0xff]  ;;  %v112_v45 = vld [vmem:[#allocation6 + $0x30] sm:$0xff] }
  0x2b   :  { %v170_v10 = vmul.f32 %v139_v8, %v139_v8  ;;  %357 = vadd.xlane.f32.xlu0 %v168_v9  ;;  %v171_v15 = vmul.f32 %v140_v14, %v140_v14  ;;  %v142_v29 = vsub.f32 %v80_v27, %v111_v28  ;;  %v143_v46 = vsub.f32 %v81_v44, %v112_v45  ;;  %v82_v61 = vld [vmem:[#allocation3 + $0x38] sm:$0xff]  ;;  %v113_v62 = vld [vmem:[#allocation6 + $0x38] sm:$0xff]  ;;  %v83_v14 = vld [vmem:[#allocation3 + $0x40] sm:$0xff] }
  0x2c   :  { %v172_v19 = vmul.f32 %v141_v18, %v141_v18  ;;  %v144_v63 = vsub.f32 %v82_v61, %v113_v62 }
  0x2d   :  { %405 = vadd.xlane.f32.xlu1 %v170_v10  ;;  %v173_v30 = vmul.f32 %v142_v29, %v142_v29  ;;  %v174_v47 = vmul.f32 %v143_v46, %v143_v46 }
  0x2e   :  { %v175_v0 = vmul.f32 %v144_v63, %v144_v63 }
  0x2f   :  { %381 = vadd.xlane.f32.xlu0 %v169_v11 }
  0x31   :  { %429 = vadd.xlane.f32.xlu1 %v171_v15  ;;  %v114_v15 = vld [vmem:[#allocation6 + $0x40] sm:$0xff] }
  0x32   :  { %v145_v16 = vsub.f32 %v83_v14, %v114_v15 }
  0x33   :  { %453 = vadd.xlane.f32.xlu0 %v172_v19 }
  0x34   :  { %v176_v17 = vmul.f32 %v145_v16, %v145_v16 }
  0x35   :  { %477 = vadd.xlane.f32.xlu1 %v173_v30 }
  0x37   :  { %501 = vadd.xlane.f32.xlu0 %v174_v47 }
  0x39   :  { %525 = vadd.xlane.f32.xlu1 %v175_v0 }
  0x3b   :  { %549 = vadd.xlane.f32.xlu0 %v176_v17 }
  0xb8   :  { %v358_v20 = vpop.xlane.xlu0 %357 }
  0xb9   :  { %v359_v21 = vrot.slane %v358_v20, 4 }
  0xba   :  { %v406_v48 = vpop.xlane.xlu1 %405 }
  0xbb   :  { %v360_v22 = vadd.f32 %v359_v21, %v358_v20  ;;  %v407_v49 = vrot.slane %v406_v48, 4 }
  0xbc   :  { %v382_v31 = vpop.xlane.xlu0 %381 }
  0xbd   :  { %v361_v23 = vrot.slane %v360_v22, 2  ;;  %v383_v32 = vrot.slane %v382_v31, 4  ;;  %v408_v50 = vadd.f32 %v407_v49, %v406_v48  ;;  %v85_v48 = vld [vmem:[#allocation3 + $0x50] sm:$0xff]  ;;  %v116_v49 = vld [vmem:[#allocation6 + $0x50] sm:$0xff] }
  0xbe   :  { %v430_v1 = vpop.xlane.xlu1 %429 }
  0xbf   :  { %v362_v24 = vadd.f32 %v361_v23, %v360_v22  ;;  %v384_v33 = vadd.f32 %v383_v32, %v382_v31  ;;  %v409_v52 = vrot.slane %v408_v50, 2  ;;  %v431_v2 = vrot.slane %v430_v1, 4  ;;  %v84_v31 = vld [vmem:[#allocation3 + $0x48] sm:$0xff]  ;;  %v115_v32 = vld [vmem:[#allocation6 + $0x48] sm:$0xff] }
  0xc0   :  { %v454_v18 = vpop.xlane.xlu0 %453 }
  0xc1   :  { %v363_v25 = vrot.slane %v362_v24, 1  ;;  %v385_v35 = vrot.slane %v384_v33, 2  ;;  %v410_v53 = vadd.f32 %v409_v52, %v408_v50  ;;  %v432_v3 = vadd.f32 %v431_v2, %v430_v1  ;;  %v86_v1 = vld [vmem:[#allocation3 + $0x58] sm:$0xff]  ;;  %v117_v2 = vld [vmem:[#allocation6 + $0x58] sm:$0xff] }
  0xc2   :  { %v455_v19 = vrot.slane %v454_v18, 4  ;;  %v147_v50 = vsub.f32 %v85_v48, %v116_v49 }
  0xc3   :  { %v364_v26 = vadd.f32 %v363_v25, %v362_v24  ;;  %v386_v36 = vadd.f32 %v385_v35, %v384_v33  ;;  %v411_v55 = vrot.slane %v410_v53, 1  ;;  %v433_v5 = vrot.slane %v432_v3, 2  ;;  %v478_v35 = vpop.xlane.xlu1 %477 }
  0xc4   :  { %v456_v20 = vadd.f32 %v455_v19, %v454_v18  ;;  %v146_v33 = vsub.f32 %v84_v31, %v115_v32  ;;  %v502_v52 = vpop.xlane.xlu0 %501  ;;  %v87_v18 = vld [vmem:[#allocation3 + $0x60] sm:$0xff]  ;;  %v118_v19 = vld [vmem:[#allocation6 + $0x60] sm:$0xff] }
  0xc5   :  { %1119 = vpush %v364_v26  ;;  %v387_v38 = vrot.slane %v386_v36, 1  ;;  %v412_v60 = vadd.f32 %v411_v55, %v410_v53  ;;  %v434_v6 = vadd.f32 %v433_v5, %v432_v3  ;;  %v503_v53 = vrot.slane %v502_v52, 4 }
  0xc6   :  { %v457_v22 = vrot.slane %v456_v20, 2  ;;  %v148_v3 = vsub.f32 %v86_v1, %v117_v2 }
  0xc7   :  { %v388_v43 = vadd.f32 %v387_v38, %v386_v36  ;;  %v435_v8 = vrot.slane %v434_v6, 1  ;;  %v479_v36 = vrot.slane %v478_v35, 4  ;;  %v526_v5 = vpop.xlane.xlu1 %525 }
  0xc8   :  { %v458_v23 = vadd.f32 %v457_v22, %v456_v20  ;;  %v149_v20 = vsub.f32 %v87_v18, %v118_v19  ;;  %v550_v22 = vpop.xlane.xlu0 %549 }
  0xc9   :  { %v436_v13 = vadd.f32 %v435_v8, %v434_v6  ;;  %v527_v6 = vrot.slane %v526_v5, 4 }
  0xca   :  { %v459_v25 = vrot.slane %v458_v23, 1 }
  0xcc   :  { %v460_v30 = vadd.f32 %v459_v25, %v458_v23  ;;  %v551_v23 = vrot.slane %v550_v22, 4 }
  0xf6   :  { %s1120_s1 = spop %1119 }
  0xf7   :  { %s368_s6 = smul.f32 0.00390625, %s1120_s1 }
  0xf9   :  { %v369_v34 = vstv %s368_s6 }
  0xfa   :  { %1248 = vrsqrt.f32 %v369_v34  ;;  %vm372_vm0 = vcmp.eq.f32.partialorder %v369_v34, inf  ;;  %v375_v40 = vand.u32 2147483648, %v369_v34  ;;  %vm374_vm1 = vcmp.eq.f32.partialorder %v369_v34, 0.0 }
 0x104   :  { %v1249_v37 = vpop.eup %1248 }
 0x105   :  { %v371_v39 = vmul.f32 %v1249_v37, %v369_v34  ;;  %v480_v37 = vadd.f32 %v479_v36, %v478_v35  ;;  %v88_v35 = vld [vmem:[#allocation3 + $0x68] sm:$0xff]  ;;  %v119_v36 = vld [vmem:[#allocation6 + $0x68] sm:$0xff] }
 0x107   :  { %v373_v41 = vsel %vm372_vm0, %v369_v34, %v371_v39  ;;  %v177_v34 = vmul.f32 %v146_v33, %v146_v33  ;;  %v481_v39 = vrot.slane %v480_v37, 2 }
 0x108   :  { %v376_v42 = vsel %vm374_vm1, %v375_v40, %v373_v41 }
 0x109   :  { %1121 = vpush %v376_v42  ;;  %573 = vadd.xlane.f32.xlu1 %v177_v34  ;;  %v482_v40 = vadd.f32 %v481_v39, %v480_v37  ;;  %v150_v37 = vsub.f32 %v88_v35, %v119_v36 }
 0x10a   :  { %1123 = vpush %v388_v43 }
 0x10b   :  { %v483_v42 = vrot.slane %v482_v40, 1 }
 0x10d   :  { %v484_v47 = vadd.f32 %v483_v42, %v482_v40 }
 0x13a   :  { %s1122_s7 = spop %1121 }
 0x13b   :  { %379 = sst [smem:[#allocation8]] %s1122_s7  ;;  %s1124_s8 = spop %1123 }
 0x13c   :  { %s392_s9 = smul.f32 0.00390625, %s1124_s8 }
 0x13e   :  { %v393_v51 = vstv %s392_s9 }
 0x13f   :  { %1250 = vrsqrt.f32 %v393_v51  ;;  %vm396_vm2 = vcmp.eq.f32.partialorder %v393_v51, inf  ;;  %v399_v57 = vand.u32 2147483648, %v393_v51  ;;  %vm398_vm3 = vcmp.eq.f32.partialorder %v393_v51, 0.0 }
 0x149   :  { %v1251_v54 = vpop.eup %1250 }
 0x14a   :  { %v395_v56 = vmul.f32 %v1251_v54, %v393_v51  ;;  %v504_v54 = vadd.f32 %v503_v53, %v502_v52  ;;  %v89_v52 = vld [vmem:[#allocation3 + $0x70] sm:$0xff]  ;;  %v120_v53 = vld [vmem:[#allocation6 + $0x70] sm:$0xff] }
 0x14c   :  { %v397_v58 = vsel %vm396_vm2, %v393_v51, %v395_v56  ;;  %v178_v51 = vmul.f32 %v147_v50, %v147_v50  ;;  %v505_v56 = vrot.slane %v504_v54, 2 }
 0x14d   :  { %v400_v59 = vsel %vm398_vm3, %v399_v57, %v397_v58 }
 0x14e   :  { %1125 = vpush %v400_v59  ;;  %597 = vadd.xlane.f32.xlu0 %v178_v51  ;;  %v506_v57 = vadd.f32 %v505_v56, %v504_v54  ;;  %v151_v54 = vsub.f32 %v89_v52, %v120_v53 }
 0x14f   :  { %1127 = vpush %v412_v60 }
 0x150   :  { %v507_v59 = vrot.slane %v506_v57, 1 }
 0x152   :  { %v508_v0 = vadd.f32 %v507_v59, %v506_v57 }
 0x17f   :  { %s1126_s10 = spop %1125 }
 0x180   :  { %403 = sst [smem:[#allocation8 + $0x80]] %s1126_s10  ;;  %s1128_s11 = spop %1127 }
 0x181   :  { %s416_s12 = smul.f32 0.00390625, %s1128_s11 }
 0x183   :  { %v417_v4 = vstv %s416_s12 }
 0x184   :  { %1252 = vrsqrt.f32 %v417_v4  ;;  %vm420_vm4 = vcmp.eq.f32.partialorder %v417_v4, inf  ;;  %v423_v10 = vand.u32 2147483648, %v417_v4  ;;  %vm422_vm5 = vcmp.eq.f32.partialorder %v417_v4, 0.0 }
 0x18e   :  { %v1253_v7 = vpop.eup %1252 }
 0x18f   :  { %v419_v9 = vmul.f32 %v1253_v7, %v417_v4  ;;  %v528_v7 = vadd.f32 %v527_v6, %v526_v5  ;;  %v90_v5 = vld [vmem:[#allocation3 + $0x78] sm:$0xff]  ;;  %v121_v6 = vld [vmem:[#allocation6 + $0x78] sm:$0xff] }
 0x191   :  { %v421_v11 = vsel %vm420_vm4, %v417_v4, %v419_v9  ;;  %v179_v4 = vmul.f32 %v148_v3, %v148_v3  ;;  %v529_v9 = vrot.slane %v528_v7, 2 }
 0x192   :  { %v424_v12 = vsel %vm422_vm5, %v423_v10, %v421_v11 }
 0x193   :  { %1129 = vpush %v424_v12  ;;  %621 = vadd.xlane.f32.xlu1 %v179_v4  ;;  %v530_v10 = vadd.f32 %v529_v9, %v528_v7  ;;  %v152_v7 = vsub.f32 %v90_v5, %v121_v6 }
 0x194   :  { %1131 = vpush %v436_v13 }
 0x195   :  { %v531_v12 = vrot.slane %v530_v10, 1 }
 0x196   :  { %v574_v39 = vpop.xlane.xlu1 %573 }
 0x197   :  { %v532_v17 = vadd.f32 %v531_v12, %v530_v10  ;;  %v575_v40 = vrot.slane %v574_v39, 4 }
 0x1c4   :  { %s1130_s13 = spop %1129 }
 0x1c5   :  { %427 = sst [smem:[#allocation8 + $0x100]] %s1130_s13  ;;  %s1132_s14 = spop %1131 }
 0x1c6   :  { %s440_s15 = smul.f32 0.00390625, %s1132_s14 }
 0x1c8   :  { %v441_v21 = vstv %s440_s15 }
 0x1c9   :  { %1254 = vrsqrt.f32 %v441_v21  ;;  %vm444_vm6 = vcmp.eq.f32.partialorder %v441_v21, inf  ;;  %v447_v27 = vand.u32 2147483648, %v441_v21  ;;  %vm446_vm7 = vcmp.eq.f32.partialorder %v441_v21, 0.0 }
 0x1d3   :  { %v1255_v24 = vpop.eup %1254 }
 0x1d4   :  { %v443_v26 = vmul.f32 %v1255_v24, %v441_v21  ;;  %v552_v24 = vadd.f32 %v551_v23, %v550_v22  ;;  %v91_v22 = vld [vmem:[#allocation3 + $0x80] sm:$0xff]  ;;  %v122_v23 = vld [vmem:[#allocation6 + $0x80] sm:$0xff] }
 0x1d6   :  { %v445_v28 = vsel %vm444_vm6, %v441_v21, %v443_v26  ;;  %v180_v21 = vmul.f32 %v149_v20, %v149_v20  ;;  %v553_v26 = vrot.slane %v552_v24, 2 }
 0x1d7   :  { %v448_v29 = vsel %vm446_vm7, %v447_v27, %v445_v28 }
 0x1d8   :  { %1133 = vpush %v448_v29  ;;  %645 = vadd.xlane.f32.xlu0 %v180_v21  ;;  %v554_v27 = vadd.f32 %v553_v26, %v552_v24  ;;  %v153_v24 = vsub.f32 %v91_v22, %v122_v23 }
 0x1d9   :  { %1135 = vpush %v460_v30 }
 0x1da   :  { %v555_v29 = vrot.slane %v554_v27, 1 }
 0x1db   :  { %v598_v56 = vpop.xlane.xlu0 %597 }
 0x1dc   :  { %v556_v34 = vadd.f32 %v555_v29, %v554_v27  ;;  %v599_v57 = vrot.slane %v598_v56, 4 }
 0x209   :  { %s1134_s16 = spop %1133 }
 0x20a   :  { %451 = sst [smem:[#allocation8 + $0x180]] %s1134_s16  ;;  %s1136_s17 = spop %1135 }
 0x20b   :  { %s464_s18 = smul.f32 0.00390625, %s1136_s17 }
 0x20d   :  { %v465_v38 = vstv %s464_s18 }
 0x20e   :  { %1256 = vrsqrt.f32 %v465_v38  ;;  %vm468_vm8 = vcmp.eq.f32.partialorder %v465_v38, inf  ;;  %v471_v44 = vand.u32 2147483648, %v465_v38  ;;  %vm470_vm9 = vcmp.eq.f32.partialorder %v465_v38, 0.0 }
 0x218   :  { %v1257_v41 = vpop.eup %1256 }
 0x219   :  { %v467_v43 = vmul.f32 %v1257_v41, %v465_v38  ;;  %v576_v41 = vadd.f32 %v575_v40, %v574_v39  ;;  %v92_v39 = vld [vmem:[#allocation3 + $0x88] sm:$0xff]  ;;  %v123_v40 = vld [vmem:[#allocation6 + $0x88] sm:$0xff] }
 0x21b   :  { %v469_v45 = vsel %vm468_vm8, %v465_v38, %v467_v43  ;;  %v181_v38 = vmul.f32 %v150_v37, %v150_v37  ;;  %v577_v43 = vrot.slane %v576_v41, 2 }
 0x21c   :  { %v472_v46 = vsel %vm470_vm9, %v471_v44, %v469_v45 }
 0x21d   :  { %1137 = vpush %v472_v46  ;;  %669 = vadd.xlane.f32.xlu1 %v181_v38  ;;  %v578_v44 = vadd.f32 %v577_v43, %v576_v41  ;;  %v154_v41 = vsub.f32 %v92_v39, %v123_v40 }
 0x21e   :  { %1139 = vpush %v484_v47 }
 0x21f   :  { %v579_v46 = vrot.slane %v578_v44, 1 }
 0x220   :  { %v622_v9 = vpop.xlane.xlu1 %621 }
 0x221   :  { %v580_v51 = vadd.f32 %v579_v46, %v578_v44  ;;  %v623_v10 = vrot.slane %v622_v9, 4 }
 0x24e   :  { %s1138_s21 = spop %1137 }
 0x24f   :  { %475 = sst [smem:[#allocation8 + $0x200]] %s1138_s21  ;;  %s1140_s22 = spop %1139 }
 0x250   :  { %s488_s23 = smul.f32 0.00390625, %s1140_s22 }
 0x252   :  { %v489_v55 = vstv %s488_s23 }
 0x253   :  { %1258 = vrsqrt.f32 %v489_v55  ;;  %vm492_vm10 = vcmp.eq.f32.partialorder %v489_v55, inf  ;;  %v495_v61 = vand.u32 2147483648, %v489_v55  ;;  %vm494_vm11 = vcmp.eq.f32.partialorder %v489_v55, 0.0 }
 0x25d   :  { %v1259_v58 = vpop.eup %1258 }
 0x25e   :  { %v491_v60 = vmul.f32 %v1259_v58, %v489_v55  ;;  %v600_v58 = vadd.f32 %v599_v57, %v598_v56  ;;  %v93_v56 = vld [vmem:[#allocation3 + $0x90] sm:$0xff]  ;;  %v124_v57 = vld [vmem:[#allocation6 + $0x90] sm:$0xff] }
 0x260   :  { %v493_v62 = vsel %vm492_vm10, %v489_v55, %v491_v60  ;;  %v182_v55 = vmul.f32 %v151_v54, %v151_v54  ;;  %v601_v60 = vrot.slane %v600_v58, 2 }
 0x261   :  { %v496_v63 = vsel %vm494_vm11, %v495_v61, %v493_v62 }
 0x262   :  { %1141 = vpush %v496_v63  ;;  %693 = vadd.xlane.f32.xlu0 %v182_v55  ;;  %v602_v61 = vadd.f32 %v601_v60, %v600_v58  ;;  %v155_v58 = vsub.f32 %v93_v56, %v124_v57 }
 0x263   :  { %1143 = vpush %v508_v0 }
 0x264   :  { %v603_v63 = vrot.slane %v602_v61, 1 }
 0x265   :  { %v646_v26 = vpop.xlane.xlu0 %645 }
 0x266   :  { %v604_v4 = vadd.f32 %v603_v63, %v602_v61  ;;  %v647_v27 = vrot.slane %v646_v26, 4 }
 0x293   :  { %s1142_s24 = spop %1141 }
 0x294   :  { %499 = sst [smem:[#allocation8 + $0x280]] %s1142_s24  ;;  %s1144_s25 = spop %1143 }
 0x295   :  { %s512_s26 = smul.f32 0.00390625, %s1144_s25 }
 0x297   :  { %v513_v8 = vstv %s512_s26 }
 0x298   :  { %1260 = vrsqrt.f32 %v513_v8  ;;  %vm516_vm12 = vcmp.eq.f32.partialorder %v513_v8, inf  ;;  %v519_v14 = vand.u32 2147483648, %v513_v8  ;;  %vm518_vm13 = vcmp.eq.f32.partialorder %v513_v8, 0.0 }
 0x2a2   :  { %v1261_v11 = vpop.eup %1260 }
 0x2a3   :  { %v515_v13 = vmul.f32 %v1261_v11, %v513_v8  ;;  %v624_v11 = vadd.f32 %v623_v10, %v622_v9  ;;  %v94_v9 = vld [vmem:[#allocation3 + $0x98] sm:$0xff]  ;;  %v125_v10 = vld [vmem:[#allocation6 + $0x98] sm:$0xff] }
 0x2a5   :  { %v517_v15 = vsel %vm516_vm12, %v513_v8, %v515_v13  ;;  %v183_v8 = vmul.f32 %v152_v7, %v152_v7  ;;  %v625_v13 = vrot.slane %v624_v11, 2 }
 0x2a6   :  { %v520_v16 = vsel %vm518_vm13, %v519_v14, %v517_v15 }
 0x2a7   :  { %1145 = vpush %v520_v16  ;;  %717 = vadd.xlane.f32.xlu1 %v183_v8  ;;  %v626_v14 = vadd.f32 %v625_v13, %v624_v11  ;;  %v156_v11 = vsub.f32 %v94_v9, %v125_v10 }
 0x2a8   :  { %1147 = vpush %v532_v17 }
 0x2a9   :  { %v627_v16 = vrot.slane %v626_v14, 1 }
 0x2aa   :  { %v670_v43 = vpop.xlane.xlu1 %669 }
 0x2ab   :  { %v628_v21 = vadd.f32 %v627_v16, %v626_v14  ;;  %v671_v44 = vrot.slane %v670_v43, 4 }
 0x2d8   :  { %s1146_s27 = spop %1145 }
 0x2d9   :  { %523 = sst [smem:[#allocation8 + $0x300]] %s1146_s27  ;;  %s1148_s28 = spop %1147 }
 0x2da   :  { %s536_s29 = smul.f32 0.00390625, %s1148_s28 }
 0x2dc   :  { %v537_v25 = vstv %s536_s29 }
 0x2dd   :  { %1262 = vrsqrt.f32 %v537_v25  ;;  %vm540_vm14 = vcmp.eq.f32.partialorder %v537_v25, inf  ;;  %v543_v31 = vand.u32 2147483648, %v537_v25  ;;  %vm542_vm15 = vcmp.eq.f32.partialorder %v537_v25, 0.0 }
 0x2e7   :  { %v1263_v28 = vpop.eup %1262 }
 0x2e8   :  { %v539_v30 = vmul.f32 %v1263_v28, %v537_v25  ;;  %v648_v28 = vadd.f32 %v647_v27, %v646_v26  ;;  %v95_v26 = vld [vmem:[#allocation3 + $0xa0] sm:$0xff]  ;;  %v126_v27 = vld [vmem:[#allocation6 + $0xa0] sm:$0xff] }
 0x2ea   :  { %v541_v32 = vsel %vm540_vm14, %v537_v25, %v539_v30  ;;  %v184_v25 = vmul.f32 %v153_v24, %v153_v24  ;;  %v649_v30 = vrot.slane %v648_v28, 2 }
 0x2eb   :  { %v544_v33 = vsel %vm542_vm15, %v543_v31, %v541_v32 }
 0x2ec   :  { %1149 = vpush %v544_v33  ;;  %741 = vadd.xlane.f32.xlu0 %v184_v25  ;;  %v650_v31 = vadd.f32 %v649_v30, %v648_v28  ;;  %v157_v28 = vsub.f32 %v95_v26, %v126_v27 }
 0x2ed   :  { %1151 = vpush %v556_v34 }
 0x2ee   :  { %v651_v33 = vrot.slane %v650_v31, 1 }
 0x2ef   :  { %v694_v60 = vpop.xlane.xlu0 %693 }
 0x2f0   :  { %v652_v38 = vadd.f32 %v651_v33, %v650_v31  ;;  %v695_v61 = vrot.slane %v694_v60, 4 }
 0x31d   :  { %s1150_s30 = spop %1149 }
 0x31e   :  { %547 = sst [smem:[#allocation8 + $0x380]] %s1150_s30  ;;  %s1152_s3 = spop %1151 }
 0x31f   :  { %s560_s4 = smul.f32 0.00390625, %s1152_s3 }
 0x321   :  { %v561_v42 = vstv %s560_s4 }
 0x322   :  { %1264 = vrsqrt.f32 %v561_v42  ;;  %vm564_vm0 = vcmp.eq.f32.partialorder %v561_v42, inf  ;;  %v567_v48 = vand.u32 2147483648, %v561_v42  ;;  %vm566_vm1 = vcmp.eq.f32.partialorder %v561_v42, 0.0 }
 0x32c   :  { %v1265_v45 = vpop.eup %1264 }
 0x32d   :  { %v563_v47 = vmul.f32 %v1265_v45, %v561_v42  ;;  %v672_v45 = vadd.f32 %v671_v44, %v670_v43  ;;  %v96_v43 = vld [vmem:[#allocation3 + $0xa8] sm:$0xff]  ;;  %v127_v44 = vld [vmem:[#allocation6 + $0xa8] sm:$0xff] }
 0x32f   :  { %v565_v49 = vsel %vm564_vm0, %v561_v42, %v563_v47  ;;  %v185_v42 = vmul.f32 %v154_v41, %v154_v41  ;;  %v673_v47 = vrot.slane %v672_v45, 2 }
 0x330   :  { %v568_v50 = vsel %vm566_vm1, %v567_v48, %v565_v49 }
 0x331   :  { %1153 = vpush %v568_v50  ;;  %765 = vadd.xlane.f32.xlu1 %v185_v42  ;;  %v674_v48 = vadd.f32 %v673_v47, %v672_v45  ;;  %v158_v45 = vsub.f32 %v96_v43, %v127_v44 }
 0x332   :  { %1155 = vpush %v580_v51 }
 0x333   :  { %v675_v50 = vrot.slane %v674_v48, 1 }
 0x334   :  { %v718_v13 = vpop.xlane.xlu1 %717 }
 0x335   :  { %v676_v55 = vadd.f32 %v675_v50, %v674_v48  ;;  %v719_v14 = vrot.slane %v718_v13, 4 }
 0x362   :  { %s1154_s0 = spop %1153 }
 0x363   :  { %571 = sst [smem:[#allocation8 + $0x400]] %s1154_s0  ;;  %s1156_s5 = spop %1155 }
 0x364   :  { %s584_s1 = smul.f32 0.00390625, %s1156_s5 }
 0x366   :  { %v585_v59 = vstv %s584_s1 }
 0x367   :  { %1266 = vrsqrt.f32 %v585_v59  ;;  %vm588_vm2 = vcmp.eq.f32.partialorder %v585_v59, inf  ;;  %v591_v1 = vand.u32 2147483648, %v585_v59  ;;  %vm590_vm3 = vcmp.eq.f32.partialorder %v585_v59, 0.0 }
 0x371   :  { %v1267_v62 = vpop.eup %1266 }
 0x372   :  { %v587_v0 = vmul.f32 %v1267_v62, %v585_v59  ;;  %v696_v62 = vadd.f32 %v695_v61, %v694_v60  ;;  %v97_v60 = vld [vmem:[#allocation3 + $0xb0] sm:$0xff]  ;;  %v128_v61 = vld [vmem:[#allocation6 + $0xb0] sm:$0xff] }
 0x374   :  { %v589_v2 = vsel %vm588_vm2, %v585_v59, %v587_v0  ;;  %v186_v59 = vmul.f32 %v155_v58, %v155_v58  ;;  %v697_v0 = vrot.slane %v696_v62, 2 }
 0x375   :  { %v592_v3 = vsel %vm590_vm3, %v591_v1, %v589_v2 }
 0x376   :  { %1157 = vpush %v592_v3  ;;  %789 = vadd.xlane.f32.xlu0 %v186_v59  ;;  %v698_v1 = vadd.f32 %v697_v0, %v696_v62  ;;  %v159_v62 = vsub.f32 %v97_v60, %v128_v61 }
 0x377   :  { %1159 = vpush %v604_v4 }
 0x378   :  { %v699_v3 = vrot.slane %v698_v1, 1 }
 0x379   :  { %v742_v30 = vpop.xlane.xlu0 %741 }
 0x37a   :  { %v700_v8 = vadd.f32 %v699_v3, %v698_v1  ;;  %v743_v31 = vrot.slane %v742_v30, 4 }
 0x3a7   :  { %s1158_s6 = spop %1157 }
 0x3a8   :  { %595 = sst [smem:[#allocation8 + $0x480]] %s1158_s6  ;;  %s1160_s7 = spop %1159 }
 0x3a9   :  { %s608_s8 = smul.f32 0.00390625, %s1160_s7 }
 0x3ab   :  { %v609_v12 = vstv %s608_s8 }
 0x3ac   :  { %1268 = vrsqrt.f32 %v609_v12  ;;  %vm612_vm4 = vcmp.eq.f32.partialorder %v609_v12, inf  ;;  %v615_v18 = vand.u32 2147483648, %v609_v12  ;;  %vm614_vm5 = vcmp.eq.f32.partialorder %v609_v12, 0.0 }
 0x3b6   :  { %v1269_v15 = vpop.eup %1268 }
 0x3b7   :  { %v611_v17 = vmul.f32 %v1269_v15, %v609_v12  ;;  %v720_v15 = vadd.f32 %v719_v14, %v718_v13  ;;  %v98_v13 = vld [vmem:[#allocation3 + $0xb8] sm:$0xff]  ;;  %v129_v14 = vld [vmem:[#allocation6 + $0xb8] sm:$0xff] }
 0x3b9   :  { %v613_v19 = vsel %vm612_vm4, %v609_v12, %v611_v17  ;;  %v187_v12 = vmul.f32 %v156_v11, %v156_v11  ;;  %v721_v17 = vrot.slane %v720_v15, 2 }
 0x3ba   :  { %v616_v20 = vsel %vm614_vm5, %v615_v18, %v613_v19 }
 0x3bb   :  { %1161 = vpush %v616_v20  ;;  %813 = vadd.xlane.f32.xlu1 %v187_v12  ;;  %v722_v18 = vadd.f32 %v721_v17, %v720_v15  ;;  %v160_v15 = vsub.f32 %v98_v13, %v129_v14 }
 0x3bc   :  { %1163 = vpush %v628_v21 }
 0x3bd   :  { %v723_v20 = vrot.slane %v722_v18, 1 }
 0x3be   :  { %v766_v47 = vpop.xlane.xlu1 %765 }
 0x3bf   :  { %v724_v25 = vadd.f32 %v723_v20, %v722_v18  ;;  %v767_v48 = vrot.slane %v766_v47, 4 }
 0x3ec   :  { %s1162_s9 = spop %1161 }
 0x3ed   :  { %619 = sst [smem:[#allocation8 + $0x500]] %s1162_s9  ;;  %s1164_s10 = spop %1163 }
 0x3ee   :  { %s632_s11 = smul.f32 0.00390625, %s1164_s10 }
 0x3f0   :  { %v633_v29 = vstv %s632_s11 }
 0x3f1   :  { %1270 = vrsqrt.f32 %v633_v29  ;;  %vm636_vm6 = vcmp.eq.f32.partialorder %v633_v29, inf  ;;  %v639_v35 = vand.u32 2147483648, %v633_v29  ;;  %vm638_vm7 = vcmp.eq.f32.partialorder %v633_v29, 0.0 }
 0x3fb   :  { %v1271_v32 = vpop.eup %1270 }
 0x3fc   :  { %v635_v34 = vmul.f32 %v1271_v32, %v633_v29  ;;  %v744_v32 = vadd.f32 %v743_v31, %v742_v30  ;;  %v99_v30 = vld [vmem:[#allocation3 + $0xc0] sm:$0xff]  ;;  %v130_v31 = vld [vmem:[#allocation6 + $0xc0] sm:$0xff] }
 0x3fe   :  { %v637_v36 = vsel %vm636_vm6, %v633_v29, %v635_v34  ;;  %v188_v29 = vmul.f32 %v157_v28, %v157_v28  ;;  %v745_v34 = vrot.slane %v744_v32, 2 }
 0x3ff   :  { %v640_v37 = vsel %vm638_vm7, %v639_v35, %v637_v36 }
 0x400   :  { %1165 = vpush %v640_v37  ;;  %837 = vadd.xlane.f32.xlu0 %v188_v29  ;;  %v746_v35 = vadd.f32 %v745_v34, %v744_v32  ;;  %v161_v32 = vsub.f32 %v99_v30, %v130_v31 }
 0x401   :  { %1167 = vpush %v652_v38 }
 0x402   :  { %v747_v37 = vrot.slane %v746_v35, 1 }
 0x403   :  { %v790_v0 = vpop.xlane.xlu0 %789 }
 0x404   :  { %v748_v42 = vadd.f32 %v747_v37, %v746_v35  ;;  %v791_v1 = vrot.slane %v790_v0, 4 }
 0x431   :  { %s1166_s12 = spop %1165 }
 0x432   :  { %643 = sst [smem:[#allocation8 + $0x580]] %s1166_s12  ;;  %s1168_s13 = spop %1167 }
 0x433   :  { %s656_s14 = smul.f32 0.00390625, %s1168_s13 }
 0x435   :  { %v657_v46 = vstv %s656_s14 }
 0x436   :  { %1272 = vrsqrt.f32 %v657_v46  ;;  %vm660_vm8 = vcmp.eq.f32.partialorder %v657_v46, inf  ;;  %v663_v52 = vand.u32 2147483648, %v657_v46  ;;  %vm662_vm9 = vcmp.eq.f32.partialorder %v657_v46, 0.0 }
 0x440   :  { %v1273_v49 = vpop.eup %1272 }
 0x441   :  { %v659_v51 = vmul.f32 %v1273_v49, %v657_v46  ;;  %v768_v49 = vadd.f32 %v767_v48, %v766_v47  ;;  %v100_v47 = vld [vmem:[#allocation3 + $0xc8] sm:$0xff]  ;;  %v131_v48 = vld [vmem:[#allocation6 + $0xc8] sm:$0xff] }
 0x443   :  { %v661_v53 = vsel %vm660_vm8, %v657_v46, %v659_v51  ;;  %v189_v46 = vmul.f32 %v158_v45, %v158_v45  ;;  %v769_v51 = vrot.slane %v768_v49, 2 }
 0x444   :  { %v664_v54 = vsel %vm662_vm9, %v663_v52, %v661_v53 }
 0x445   :  { %1169 = vpush %v664_v54  ;;  %861 = vadd.xlane.f32.xlu1 %v189_v46  ;;  %v770_v52 = vadd.f32 %v769_v51, %v768_v49  ;;  %v162_v49 = vsub.f32 %v100_v47, %v131_v48 }
 0x446   :  { %1171 = vpush %v676_v55 }
 0x447   :  { %v771_v54 = vrot.slane %v770_v52, 1 }
 0x448   :  { %v814_v17 = vpop.xlane.xlu1 %813 }
 0x449   :  { %v772_v59 = vadd.f32 %v771_v54, %v770_v52  ;;  %v815_v18 = vrot.slane %v814_v17, 4 }
 0x476   :  { %s1170_s15 = spop %1169 }
 0x477   :  { %667 = sst [smem:[#allocation8 + $0x600]] %s1170_s15  ;;  %s1172_s16 = spop %1171 }
 0x478   :  { %s680_s17 = smul.f32 0.00390625, %s1172_s16 }
 0x47a   :  { %v681_v63 = vstv %s680_s17 }
 0x47b   :  { %1274 = vrsqrt.f32 %v681_v63  ;;  %vm684_vm10 = vcmp.eq.f32.partialorder %v681_v63, inf  ;;  %v687_v5 = vand.u32 2147483648, %v681_v63  ;;  %vm686_vm11 = vcmp.eq.f32.partialorder %v681_v63, 0.0 }
 0x485   :  { %v1275_v2 = vpop.eup %1274 }
 0x486   :  { %v683_v4 = vmul.f32 %v1275_v2, %v681_v63  ;;  %v792_v2 = vadd.f32 %v791_v1, %v790_v0  ;;  %v101_v0 = vld [vmem:[#allocation3 + $0xd0] sm:$0xff]  ;;  %v132_v1 = vld [vmem:[#allocation6 + $0xd0] sm:$0xff] }
 0x488   :  { %v685_v6 = vsel %vm684_vm10, %v681_v63, %v683_v4  ;;  %v190_v63 = vmul.f32 %v159_v62, %v159_v62  ;;  %v793_v4 = vrot.slane %v792_v2, 2 }
 0x489   :  { %v688_v7 = vsel %vm686_vm11, %v687_v5, %v685_v6 }
 0x48a   :  { %1173 = vpush %v688_v7  ;;  %885 = vadd.xlane.f32.xlu0 %v190_v63  ;;  %v794_v5 = vadd.f32 %v793_v4, %v792_v2  ;;  %v163_v2 = vsub.f32 %v101_v0, %v132_v1 }
 0x48b   :  { %1175 = vpush %v700_v8 }
 0x48c   :  { %v795_v7 = vrot.slane %v794_v5, 1 }
 0x48d   :  { %v838_v34 = vpop.xlane.xlu0 %837 }
 0x48e   :  { %v796_v12 = vadd.f32 %v795_v7, %v794_v5  ;;  %v839_v35 = vrot.slane %v838_v34, 4 }
 0x4bb   :  { %s1174_s18 = spop %1173 }
 0x4bc   :  { %691 = sst [smem:[#allocation8 + $0x680]] %s1174_s18  ;;  %s1176_s21 = spop %1175 }
 0x4bd   :  { %s704_s22 = smul.f32 0.00390625, %s1176_s21 }
 0x4bf   :  { %v705_v16 = vstv %s704_s22 }
 0x4c0   :  { %1276 = vrsqrt.f32 %v705_v16  ;;  %vm708_vm12 = vcmp.eq.f32.partialorder %v705_v16, inf  ;;  %v711_v22 = vand.u32 2147483648, %v705_v16  ;;  %vm710_vm13 = vcmp.eq.f32.partialorder %v705_v16, 0.0 }
 0x4ca   :  { %v1277_v19 = vpop.eup %1276 }
 0x4cb   :  { %v707_v21 = vmul.f32 %v1277_v19, %v705_v16  ;;  %v816_v19 = vadd.f32 %v815_v18, %v814_v17  ;;  %v102_v17 = vld [vmem:[#allocation3 + $0xd8] sm:$0xff]  ;;  %v133_v18 = vld [vmem:[#allocation6 + $0xd8] sm:$0xff] }
 0x4cd   :  { %v709_v23 = vsel %vm708_vm12, %v705_v16, %v707_v21  ;;  %v191_v16 = vmul.f32 %v160_v15, %v160_v15  ;;  %v817_v21 = vrot.slane %v816_v19, 2 }
 0x4ce   :  { %v712_v24 = vsel %vm710_vm13, %v711_v22, %v709_v23 }
 0x4cf   :  { %1177 = vpush %v712_v24  ;;  %909 = vadd.xlane.f32.xlu1 %v191_v16  ;;  %v818_v22 = vadd.f32 %v817_v21, %v816_v19  ;;  %v164_v19 = vsub.f32 %v102_v17, %v133_v18 }
 0x4d0   :  { %1179 = vpush %v724_v25 }
 0x4d1   :  { %v819_v24 = vrot.slane %v818_v22, 1 }
 0x4d2   :  { %v862_v51 = vpop.xlane.xlu1 %861 }
 0x4d3   :  { %v820_v29 = vadd.f32 %v819_v24, %v818_v22  ;;  %v863_v52 = vrot.slane %v862_v51, 4 }
 0x500   :  { %s1178_s23 = spop %1177 }
 0x501   :  { %715 = sst [smem:[#allocation8 + $0x700]] %s1178_s23  ;;  %s1180_s24 = spop %1179 }
 0x502   :  { %s728_s25 = smul.f32 0.00390625, %s1180_s24 }
 0x504   :  { %v729_v33 = vstv %s728_s25 }
 0x505   :  { %1278 = vrsqrt.f32 %v729_v33  ;;  %vm732_vm14 = vcmp.eq.f32.partialorder %v729_v33, inf  ;;  %v735_v39 = vand.u32 2147483648, %v729_v33  ;;  %vm734_vm15 = vcmp.eq.f32.partialorder %v729_v33, 0.0 }
 0x50f   :  { %v1279_v36 = vpop.eup %1278 }
 0x510   :  { %v731_v38 = vmul.f32 %v1279_v36, %v729_v33  ;;  %v840_v36 = vadd.f32 %v839_v35, %v838_v34  ;;  %v103_v34 = vld [vmem:[#allocation3 + $0xe0] sm:$0xff]  ;;  %v134_v35 = vld [vmem:[#allocation6 + $0xe0] sm:$0xff] }
 0x512   :  { %v733_v40 = vsel %vm732_vm14, %v729_v33, %v731_v38  ;;  %v192_v33 = vmul.f32 %v161_v32, %v161_v32  ;;  %v841_v38 = vrot.slane %v840_v36, 2 }
 0x513   :  { %v736_v41 = vsel %vm734_vm15, %v735_v39, %v733_v40 }
 0x514   :  { %1181 = vpush %v736_v41  ;;  %933 = vadd.xlane.f32.xlu0 %v192_v33  ;;  %v842_v39 = vadd.f32 %v841_v38, %v840_v36  ;;  %v165_v36 = vsub.f32 %v103_v34, %v134_v35 }
 0x515   :  { %1183 = vpush %v748_v42 }
 0x516   :  { %v843_v41 = vrot.slane %v842_v39, 1 }
 0x517   :  { %v886_v4 = vpop.xlane.xlu0 %885 }
 0x518   :  { %v844_v46 = vadd.f32 %v843_v41, %v842_v39  ;;  %v887_v5 = vrot.slane %v886_v4, 4 }
 0x545   :  { %s1182_s26 = spop %1181 }
 0x546   :  { %739 = sst [smem:[#allocation8 + $0x780]] %s1182_s26  ;;  %s1184_s27 = spop %1183 }
 0x547   :  { %s752_s28 = smul.f32 0.00390625, %s1184_s27 }
 0x549   :  { %v753_v50 = vstv %s752_s28 }
 0x54a   :  { %1280 = vrsqrt.f32 %v753_v50  ;;  %vm756_vm0 = vcmp.eq.f32.partialorder %v753_v50, inf  ;;  %v759_v56 = vand.u32 2147483648, %v753_v50  ;;  %vm758_vm1 = vcmp.eq.f32.partialorder %v753_v50, 0.0 }
 0x554   :  { %v1281_v53 = vpop.eup %1280 }
 0x555   :  { %v755_v55 = vmul.f32 %v1281_v53, %v753_v50  ;;  %v864_v53 = vadd.f32 %v863_v52, %v862_v51  ;;  %v104_v51 = vld [vmem:[#allocation3 + $0xe8] sm:$0xff]  ;;  %v135_v52 = vld [vmem:[#allocation6 + $0xe8] sm:$0xff] }
 0x557   :  { %v757_v57 = vsel %vm756_vm0, %v753_v50, %v755_v55  ;;  %v193_v50 = vmul.f32 %v162_v49, %v162_v49  ;;  %v865_v55 = vrot.slane %v864_v53, 2 }
 0x558   :  { %v760_v58 = vsel %vm758_vm1, %v759_v56, %v757_v57 }
 0x559   :  { %1185 = vpush %v760_v58  ;;  %957 = vadd.xlane.f32.xlu1 %v193_v50  ;;  %v866_v56 = vadd.f32 %v865_v55, %v864_v53  ;;  %v166_v53 = vsub.f32 %v104_v51, %v135_v52 }
 0x55a   :  { %1187 = vpush %v772_v59 }
 0x55b   :  { %v867_v58 = vrot.slane %v866_v56, 1 }
 0x55c   :  { %v910_v21 = vpop.xlane.xlu1 %909 }
 0x55d   :  { %v868_v63 = vadd.f32 %v867_v58, %v866_v56  ;;  %v911_v22 = vrot.slane %v910_v21, 4 }
 0x58a   :  { %s1186_s29 = spop %1185 }
 0x58b   :  { %763 = sst [smem:[#allocation8 + $0x800]] %s1186_s29  ;;  %s1188_s30 = spop %1187 }
 0x58c   :  { %s776_s3 = smul.f32 0.00390625, %s1188_s30 }
 0x58e   :  { %v777_v3 = vstv %s776_s3 }
 0x58f   :  { %1282 = vrsqrt.f32 %v777_v3  ;;  %vm780_vm2 = vcmp.eq.f32.partialorder %v777_v3, inf  ;;  %v783_v9 = vand.u32 2147483648, %v777_v3  ;;  %vm782_vm3 = vcmp.eq.f32.partialorder %v777_v3, 0.0 }
 0x599   :  { %v1283_v6 = vpop.eup %1282 }
 0x59a   :  { %v779_v8 = vmul.f32 %v1283_v6, %v777_v3  ;;  %v888_v6 = vadd.f32 %v887_v5, %v886_v4  ;;  %v105_v4 = vld [vmem:[#allocation3 + $0xf0] sm:$0xff]  ;;  %v136_v5 = vld [vmem:[#allocation6 + $0xf0] sm:$0xff] }
 0x59c   :  { %v781_v10 = vsel %vm780_vm2, %v777_v3, %v779_v8  ;;  %v194_v3 = vmul.f32 %v163_v2, %v163_v2  ;;  %v889_v8 = vrot.slane %v888_v6, 2 }
 0x59d   :  { %v784_v11 = vsel %vm782_vm3, %v783_v9, %v781_v10 }
 0x59e   :  { %1189 = vpush %v784_v11  ;;  %981 = vadd.xlane.f32.xlu0 %v194_v3  ;;  %v890_v9 = vadd.f32 %v889_v8, %v888_v6  ;;  %v167_v6 = vsub.f32 %v105_v4, %v136_v5 }
 0x59f   :  { %1191 = vpush %v796_v12 }
 0x5a0   :  { %v891_v11 = vrot.slane %v890_v9, 1 }
 0x5a1   :  { %v934_v38 = vpop.xlane.xlu0 %933 }
 0x5a2   :  { %v892_v16 = vadd.f32 %v891_v11, %v890_v9  ;;  %v935_v39 = vrot.slane %v934_v38, 4 }
 0x5cf   :  { %s1190_s4 = spop %1189 }
 0x5d0   :  { %787 = sst [smem:[#allocation8 + $0x880]] %s1190_s4  ;;  %s1192_s0 = spop %1191 }
 0x5d1   :  { %s800_s5 = smul.f32 0.00390625, %s1192_s0 }
 0x5d3   :  { %v801_v20 = vstv %s800_s5 }
 0x5d4   :  { %1284 = vrsqrt.f32 %v801_v20  ;;  %vm804_vm4 = vcmp.eq.f32.partialorder %v801_v20, inf  ;;  %v807_v26 = vand.u32 2147483648, %v801_v20  ;;  %vm806_vm5 = vcmp.eq.f32.partialorder %v801_v20, 0.0 }
 0x5de   :  { %v1285_v23 = vpop.eup %1284 }
 0x5df   :  { %v803_v25 = vmul.f32 %v1285_v23, %v801_v20  ;;  %v912_v23 = vadd.f32 %v911_v22, %v910_v21 }
 0x5e1   :  { %v805_v27 = vsel %vm804_vm4, %v801_v20, %v803_v25  ;;  %v195_v20 = vmul.f32 %v164_v19, %v164_v19  ;;  %v913_v25 = vrot.slane %v912_v23, 2 }
 0x5e2   :  { %v808_v28 = vsel %vm806_vm5, %v807_v26, %v805_v27 }
 0x5e3   :  { %1193 = vpush %v808_v28  ;;  %1005 = vadd.xlane.f32.xlu1 %v195_v20  ;;  %v914_v26 = vadd.f32 %v913_v25, %v912_v23 }
 0x5e4   :  { %1195 = vpush %v820_v29 }
 0x5e5   :  { %v915_v28 = vrot.slane %v914_v26, 1 }
 0x5e6   :  { %v958_v55 = vpop.xlane.xlu1 %957 }
 0x5e7   :  { %v916_v33 = vadd.f32 %v915_v28, %v914_v26  ;;  %v959_v56 = vrot.slane %v958_v55, 4 }
 0x614   :  { %s1194_s1 = spop %1193 }
 0x615   :  { %811 = sst [smem:[#allocation8 + $0x900]] %s1194_s1  ;;  %s1196_s6 = spop %1195 }
 0x616   :  { %s824_s7 = smul.f32 0.00390625, %s1196_s6 }
 0x618   :  { %v825_v37 = vstv %s824_s7 }
 0x619   :  { %1286 = vrsqrt.f32 %v825_v37  ;;  %vm828_vm6 = vcmp.eq.f32.partialorder %v825_v37, inf  ;;  %v831_v43 = vand.u32 2147483648, %v825_v37  ;;  %vm830_vm7 = vcmp.eq.f32.partialorder %v825_v37, 0.0 }
 0x623   :  { %v1287_v40 = vpop.eup %1286 }
 0x624   :  { %v827_v42 = vmul.f32 %v1287_v40, %v825_v37  ;;  %v936_v40 = vadd.f32 %v935_v39, %v934_v38 }
 0x626   :  { %v829_v44 = vsel %vm828_vm6, %v825_v37, %v827_v42  ;;  %v196_v37 = vmul.f32 %v165_v36, %v165_v36  ;;  %v937_v42 = vrot.slane %v936_v40, 2 }
 0x627   :  { %v832_v45 = vsel %vm830_vm7, %v831_v43, %v829_v44 }
 0x628   :  { %1197 = vpush %v832_v45  ;;  %1029 = vadd.xlane.f32.xlu0 %v196_v37  ;;  %v938_v43 = vadd.f32 %v937_v42, %v936_v40 }
 0x629   :  { %1199 = vpush %v844_v46 }
 0x62a   :  { %v939_v45 = vrot.slane %v938_v43, 1 }
 0x62b   :  { %v982_v8 = vpop.xlane.xlu0 %981 }
 0x62c   :  { %v940_v50 = vadd.f32 %v939_v45, %v938_v43  ;;  %v983_v9 = vrot.slane %v982_v8, 4 }
 0x659   :  { %s1198_s8 = spop %1197 }
 0x65a   :  { %835 = sst [smem:[#allocation8 + $0x980]] %s1198_s8  ;;  %s1200_s9 = spop %1199 }
 0x65b   :  { %s848_s10 = smul.f32 0.00390625, %s1200_s9 }
 0x65d   :  { %v849_v54 = vstv %s848_s10 }
 0x65e   :  { %1288 = vrsqrt.f32 %v849_v54  ;;  %vm852_vm8 = vcmp.eq.f32.partialorder %v849_v54, inf  ;;  %v855_v60 = vand.u32 2147483648, %v849_v54  ;;  %vm854_vm9 = vcmp.eq.f32.partialorder %v849_v54, 0.0 }
 0x668   :  { %v1289_v57 = vpop.eup %1288 }
 0x669   :  { %v851_v59 = vmul.f32 %v1289_v57, %v849_v54  ;;  %v960_v57 = vadd.f32 %v959_v56, %v958_v55 }
 0x66b   :  { %v853_v61 = vsel %vm852_vm8, %v849_v54, %v851_v59  ;;  %v197_v54 = vmul.f32 %v166_v53, %v166_v53  ;;  %v961_v59 = vrot.slane %v960_v57, 2 }
 0x66c   :  { %v856_v62 = vsel %vm854_vm9, %v855_v60, %v853_v61 }
 0x66d   :  { %1201 = vpush %v856_v62  ;;  %1053 = vadd.xlane.f32.xlu1 %v197_v54  ;;  %v962_v60 = vadd.f32 %v961_v59, %v960_v57 }
 0x66e   :  { %1203 = vpush %v868_v63 }
 0x66f   :  { %v963_v62 = vrot.slane %v962_v60, 1 }
 0x670   :  { %v1006_v21 = vpop.xlane.xlu1 %1005 }
 0x671   :  { %v964_v3 = vadd.f32 %v963_v62, %v962_v60  ;;  %v1007_v22 = vrot.slane %v1006_v21, 4 }
 0x673   :  { %v1008_v23 = vadd.f32 %v1007_v22, %v1006_v21 }
 0x675   :  { %v1009_v25 = vrot.slane %v1008_v23, 2 }
 0x677   :  { %v1010_v26 = vadd.f32 %v1009_v25, %v1008_v23 }
 0x679   :  { %v1011_v28 = vrot.slane %v1010_v26, 1 }
 0x69e   :  { %s1202_s11 = spop %1201 }
 0x69f   :  { %859 = sst [smem:[#allocation8 + $0xa00]] %s1202_s11  ;;  %s1204_s12 = spop %1203 }
 0x6a0   :  { %s872_s13 = smul.f32 0.00390625, %s1204_s12 }
 0x6a2   :  { %v873_v7 = vstv %s872_s13 }
 0x6a3   :  { %1290 = vrsqrt.f32 %v873_v7  ;;  %vm876_vm10 = vcmp.eq.f32.partialorder %v873_v7, inf  ;;  %v879_v13 = vand.u32 2147483648, %v873_v7  ;;  %vm878_vm11 = vcmp.eq.f32.partialorder %v873_v7, 0.0 }
 0x6ad   :  { %v1291_v10 = vpop.eup %1290 }
 0x6ae   :  { %v875_v12 = vmul.f32 %v1291_v10, %v873_v7  ;;  %v984_v10 = vadd.f32 %v983_v9, %v982_v8 }
 0x6b0   :  { %v877_v14 = vsel %vm876_vm10, %v873_v7, %v875_v12  ;;  %v198_v7 = vmul.f32 %v167_v6, %v167_v6  ;;  %v985_v12 = vrot.slane %v984_v10, 2 }
 0x6b1   :  { %v880_v15 = vsel %vm878_vm11, %v879_v13, %v877_v14 }
 0x6b2   :  { %1205 = vpush %v880_v15  ;;  %1077 = vadd.xlane.f32.xlu0 %v198_v7  ;;  %v986_v13 = vadd.f32 %v985_v12, %v984_v10 }
 0x6b3   :  { %1207 = vpush %v892_v16 }
 0x6b4   :  { %v987_v15 = vrot.slane %v986_v13, 1 }
 0x6b5   :  { %v1030_v34 = vpop.xlane.xlu0 %1029 }
 0x6b6   :  { %v988_v20 = vadd.f32 %v987_v15, %v986_v13  ;;  %v1031_v35 = vrot.slane %v1030_v34, 4 }
 0x6b8   :  { %v1032_v36 = vadd.f32 %v1031_v35, %v1030_v34 }
 0x6ba   :  { %v1033_v38 = vrot.slane %v1032_v36, 2 }
 0x6bc   :  { %v1034_v39 = vadd.f32 %v1033_v38, %v1032_v36 }
 0x6e3   :  { %s1206_s14 = spop %1205 }
 0x6e4   :  { %883 = sst [smem:[#allocation8 + $0xa80]] %s1206_s14  ;;  %s1208_s15 = spop %1207 }
 0x6e5   :  { %s896_s16 = smul.f32 0.00390625, %s1208_s15  ;;  %s1105_s15 = sshll.u32 %s1430_s2, 4  ;;  %s1106_s15 = int_to_ptr.vmem [resolvable:$true] %s1105_s15 }
 0x6e6   :  { %p1359_p3 = scmp.lt.s32.totalorder %s1106_s15, %s1106_s15 }
 0x6e7   :  { %v897_v24 = vstv %s896_s16 }
 0x6e8   :  { %1292 = vrsqrt.f32 %v897_v24  ;;  %vm900_vm12 = vcmp.eq.f32.partialorder %v897_v24, inf  ;;  %v903_v30 = vand.u32 2147483648, %v897_v24  ;;  %vm902_vm13 = vcmp.eq.f32.partialorder %v897_v24, 0.0 }
 0x6f2   :  { %v1293_v27 = vpop.eup %1292 }
 0x6f3   :  { %v899_v29 = vmul.f32 %v1293_v27, %v897_v24 }
 0x6f5   :  { %v901_v31 = vsel %vm900_vm12, %v897_v24, %v899_v29 }
 0x6f6   :  { %v904_v32 = vsel %vm902_vm13, %v903_v30, %v901_v31 }
 0x6f7   :  { %1209 = vpush %v904_v32 }
 0x6f8   :  { %1211 = vpush %v916_v33  ;;  %v1012_v33 = vadd.f32 %v1011_v28, %v1010_v26 }
 0x728   :  { %s1210_s17 = spop %1209 }
 0x729   :  { %907 = sst [smem:[#allocation8 + $0xb00]] %s1210_s17  ;;  %s1212_s18 = spop %1211 }
 0x72a   :  { %s920_s21 = smul.f32 0.00390625, %s1212_s18  ;;  %s1354_s17 = scalar_lea.vmem %s1106_s15, 512 }
 0x72b   :  { %p1355_p2 = scmp.ne.s32.totalorder %s1106_s15, %s1354_s17  ;;  %p1360_p4 = scmp.lt.s32.totalorder %s1354_s17, %s1354_s17 }
 0x72c   :  { %v921_v41 = vstv %s920_s21 }
 0x72d   :  { %1294 = vrsqrt.f32 %v921_v41  ;;  %vm924_vm14 = vcmp.eq.f32.partialorder %v921_v41, inf  ;;  %v927_v47 = vand.u32 2147483648, %v921_v41  ;;  %vm926_vm15 = vcmp.eq.f32.partialorder %v921_v41, 0.0  ;;  %p1361_p5 = por %p1360_p4, %p1359_p3 }
 0x72f   :  { %p1362_p6 = pnand %p1361_p5, %p1355_p2 }
 0x737   :  { %v1295_v44 = vpop.eup %1294 }
 0x738   :  { %v923_v46 = vmul.f32 %v1295_v44, %v921_v41 }
 0x73a   :  { %v925_v48 = vsel %vm924_vm14, %v921_v41, %v923_v46  ;;  %v1035_v41 = vrot.slane %v1034_v39, 1 }
 0x73b   :  { %v928_v49 = vsel %vm926_vm15, %v927_v47, %v925_v48  ;;  %v1054_v47 = vpop.xlane.xlu1 %1053 }
 0x73c   :  { %1213 = vpush %v928_v49  ;;  %v1036_v46 = vadd.f32 %v1035_v41, %v1034_v39  ;;  %v1055_v48 = vrot.slane %v1054_v47, 4 }
 0x73d   :  { %1215 = vpush %v940_v50 }
 0x73e   :  { %v1056_v49 = vadd.f32 %v1055_v48, %v1054_v47 }
 0x73f   :  { %v1078_v60 = vpop.xlane.xlu0 %1077 }
 0x740   :  { %v1057_v51 = vrot.slane %v1056_v49, 2 }
 0x742   :  { %v1058_v52 = vadd.f32 %v1057_v51, %v1056_v49 }
 0x744   :  { %v1059_v54 = vrot.slane %v1058_v52, 1 }
 0x746   :  { %v1060_v59 = vadd.f32 %v1059_v54, %v1058_v52 }
 0x76d   :  { %s1214_s22 = spop %1213 }
 0x76e   :  { %931 = sst [smem:[#allocation8 + $0xb80]] %s1214_s22  ;;  %s1216_s23 = spop %1215 }
 0x76f   :  { %s944_s24 = smul.f32 0.00390625, %s1216_s23 }
 0x771   :  { %v945_v58 = vstv %s944_s24 }
 0x772   :  { %1296 = vrsqrt.f32 %v945_v58  ;;  %vm948_vm0 = vcmp.eq.f32.partialorder %v945_v58, inf  ;;  %v951_v0 = vand.u32 2147483648, %v945_v58  ;;  %vm950_vm1 = vcmp.eq.f32.partialorder %v945_v58, 0.0 }
 0x77c   :  { %v1297_v61 = vpop.eup %1296 }
 0x77d   :  { %v947_v63 = vmul.f32 %v1297_v61, %v945_v58  ;;  %v1079_v61 = vrot.slane %v1078_v60, 4 }
 0x77f   :  { %v949_v1 = vsel %vm948_vm0, %v945_v58, %v947_v63  ;;  %v1080_v62 = vadd.f32 %v1079_v61, %v1078_v60 }
 0x780   :  { %v952_v2 = vsel %vm950_vm1, %v951_v0, %v949_v1 }
 0x781   :  { %1217 = vpush %v952_v2  ;;  %v1081_v0 = vrot.slane %v1080_v62, 2 }
 0x782   :  { %1219 = vpush %v964_v3 }
 0x783   :  { %v1082_v1 = vadd.f32 %v1081_v0, %v1080_v62 }
 0x785   :  { %v1083_v3 = vrot.slane %v1082_v1, 1 }
 0x787   :  { %v1084_v8 = vadd.f32 %v1083_v3, %v1082_v1 }
 0x7b2   :  { %s1218_s25 = spop %1217 }
 0x7b3   :  { %955 = sst [smem:[#allocation8 + $0xc00]] %s1218_s25  ;;  %s1220_s26 = spop %1219 }
 0x7b4   :  { %s968_s27 = smul.f32 0.00390625, %s1220_s26 }
 0x7b6   :  { %v969_v11 = vstv %s968_s27 }
 0x7b7   :  { %1298 = vrsqrt.f32 %v969_v11  ;;  %vm972_vm2 = vcmp.eq.f32.partialorder %v969_v11, inf  ;;  %v975_v17 = vand.u32 2147483648, %v969_v11  ;;  %vm974_vm3 = vcmp.eq.f32.partialorder %v969_v11, 0.0 }
 0x7c1   :  { %v1299_v14 = vpop.eup %1298 }
 0x7c2   :  { %v971_v16 = vmul.f32 %v1299_v14, %v969_v11 }
 0x7c4   :  { %v973_v18 = vsel %vm972_vm2, %v969_v11, %v971_v16 }
 0x7c5   :  { %v976_v19 = vsel %vm974_vm3, %v975_v17, %v973_v18 }
 0x7c6   :  { %1221 = vpush %v976_v19 }
 0x7c7   :  { %1223 = vpush %v988_v20 }
 0x7f7   :  { %s1222_s28 = spop %1221 }
 0x7f8   :  { %979 = sst [smem:[#allocation8 + $0xc80]] %s1222_s28  ;;  %s1224_s29 = spop %1223 }
 0x7f9   :  { %s992_s30 = smul.f32 0.00390625, %s1224_s29 }
 0x7fb   :  { %v993_v24 = vstv %s992_s30 }
 0x7fc   :  { %1300 = vrsqrt.f32 %v993_v24  ;;  %vm996_vm4 = vcmp.eq.f32.partialorder %v993_v24, inf  ;;  %v999_v30 = vand.u32 2147483648, %v993_v24  ;;  %vm998_vm5 = vcmp.eq.f32.partialorder %v993_v24, 0.0 }
 0x806   :  { %v1301_v27 = vpop.eup %1300 }
 0x807   :  { %v995_v29 = vmul.f32 %v1301_v27, %v993_v24 }
 0x809   :  { %v997_v31 = vsel %vm996_vm4, %v993_v24, %v995_v29 }
 0x80a   :  { %v1000_v32 = vsel %vm998_vm5, %v999_v30, %v997_v31 }
 0x80b   :  { %1225 = vpush %v1000_v32 }
 0x80c   :  { %1227 = vpush %v1012_v33 }
 0x83c   :  { %s1226_s3 = spop %1225 }
 0x83d   :  { %1003 = sst [smem:[#allocation8 + $0xd00]] %s1226_s3  ;;  %s1228_s4 = spop %1227 }
 0x83e   :  { %s1016_s0 = smul.f32 0.00390625, %s1228_s4 }
 0x840   :  { %v1017_v37 = vstv %s1016_s0 }
 0x841   :  { %1302 = vrsqrt.f32 %v1017_v37  ;;  %vm1020_vm6 = vcmp.eq.f32.partialorder %v1017_v37, inf  ;;  %v1023_v43 = vand.u32 2147483648, %v1017_v37  ;;  %vm1022_vm7 = vcmp.eq.f32.partialorder %v1017_v37, 0.0 }
 0x84b   :  { %v1303_v40 = vpop.eup %1302 }
 0x84c   :  { %v1019_v42 = vmul.f32 %v1303_v40, %v1017_v37 }
 0x84e   :  { %v1021_v44 = vsel %vm1020_vm6, %v1017_v37, %v1019_v42 }
 0x84f   :  { %v1024_v45 = vsel %vm1022_vm7, %v1023_v43, %v1021_v44 }
 0x850   :  { %1229 = vpush %v1024_v45 }
 0x851   :  { %1231 = vpush %v1036_v46 }
 0x881   :  { %s1230_s5 = spop %1229 }
 0x882   :  { %1027 = sst [smem:[#allocation8 + $0xd80]] %s1230_s5  ;;  %s1232_s1 = spop %1231 }
 0x883   :  { %s1040_s6 = smul.f32 0.00390625, %s1232_s1 }
 0x885   :  { %v1041_v50 = vstv %s1040_s6 }
 0x886   :  { %1304 = vrsqrt.f32 %v1041_v50  ;;  %vm1044_vm8 = vcmp.eq.f32.partialorder %v1041_v50, inf  ;;  %v1047_v56 = vand.u32 2147483648, %v1041_v50  ;;  %vm1046_vm9 = vcmp.eq.f32.partialorder %v1041_v50, 0.0 }
 0x890   :  { %v1305_v53 = vpop.eup %1304 }
 0x891   :  { %v1043_v55 = vmul.f32 %v1305_v53, %v1041_v50 }
 0x893   :  { %v1045_v57 = vsel %vm1044_vm8, %v1041_v50, %v1043_v55 }
 0x894   :  { %v1048_v58 = vsel %vm1046_vm9, %v1047_v56, %v1045_v57 }
 0x895   :  { %1233 = vpush %v1048_v58 }
 0x896   :  { %1235 = vpush %v1060_v59 }
 0x8c6   :  { %s1234_s7 = spop %1233 }
 0x8c7   :  { %1051 = sst [smem:[#allocation8 + $0xe00]] %s1234_s7  ;;  %s1236_s8 = spop %1235 }
 0x8c8   :  { %s1064_s9 = smul.f32 0.00390625, %s1236_s8 }
 0x8ca   :  { %v1065_v63 = vstv %s1064_s9 }
 0x8cb   :  { %1306 = vrsqrt.f32 %v1065_v63  ;;  %vm1068_vm10 = vcmp.eq.f32.partialorder %v1065_v63, inf  ;;  %v1071_v5 = vand.u32 2147483648, %v1065_v63  ;;  %vm1070_vm11 = vcmp.eq.f32.partialorder %v1065_v63, 0.0 }
 0x8d5   :  { %v1307_v2 = vpop.eup %1306 }
 0x8d6   :  { %v1067_v4 = vmul.f32 %v1307_v2, %v1065_v63 }
 0x8d8   :  { %v1069_v6 = vsel %vm1068_vm10, %v1065_v63, %v1067_v4 }
 0x8d9   :  { %v1072_v7 = vsel %vm1070_vm11, %v1071_v5, %v1069_v6 }
 0x8da   :  { %1237 = vpush %v1072_v7 }
 0x8db   :  { %1239 = vpush %v1084_v8 }
 0x90b   :  { %s1238_s10 = spop %1237 }
 0x90c   :  { %1075 = sst [smem:[#allocation8 + $0xe80]] %s1238_s10  ;;  %s1240_s11 = spop %1239 }
 0x90d   :  { %s1088_s12 = smul.f32 0.00390625, %s1240_s11 }
 0x90f   :  { %v1089_v9 = vstv %s1088_s12 }
 0x910   :  { %1308 = vrsqrt.f32 %v1089_v9  ;;  %vm1092_vm12 = vcmp.eq.f32.partialorder %v1089_v9, inf  ;;  %v1095_v12 = vand.u32 2147483648, %v1089_v9  ;;  %vm1094_vm13 = vcmp.eq.f32.partialorder %v1089_v9, 0.0 }
 0x91a   :  { %v1309_v10 = vpop.eup %1308 }
 0x91b   :  { %v1091_v11 = vmul.f32 %v1309_v10, %v1089_v9 }
 0x91d   :  { %v1093_v13 = vsel %vm1092_vm12, %v1089_v9, %v1091_v11 }
 0x91e   :  { %v1096_v14 = vsel %vm1094_vm13, %v1095_v12, %v1093_v13 }
 0x91f   :  { %1241 = vpush %v1096_v14 }
 0x950   :  { %s1242_s16 = spop %1241 }
 0x951   :  { %1099 = sst [smem:[#allocation8 + $0xf00]] %s1242_s16 }
 0x952   :  { %1365 = shalt.err (!%p1362_p6)
}
 0x953   :  { %s1376_s18 = smov [#allocation8]  }
 0x954   :  { %1111 = dma.smem_to_vmem %s1376_s18, 512, %s1106_s15, [#allocation5], %s1373_s19, %s1373_s19, %s1374_s20  }
 0x955   :  { %1370 = dma.done.wait [#allocation5], 512  }
 0x956   :  { %1371 = vsyncadd [#allocation5], 4294966784 }
 0x957   :  { %1115 = sfence }
 0x958   :  { %1116 = vsyncpa [#allocation4], 1 }
 0x959   :  { %1117 = vsyncpa [#allocation7], 1 }
 0x95a   :  { %1118 = vsyncpa [#allocation5], 1 }

</bundles_post_ra>
